<compile_context>
chip_gen: v5e
topology: v5e:2x2
jax: 0.10.0
libtpu: 0.0.40
codegen_flags: <defaults>
</compile_context>

<pallas_src>
import numpy as np
import jax
import jax.numpy as jnp
from jax import lax
from jax.experimental import pallas as pl
from jax.experimental.pallas import tpu as pltpu

# ---------------- hyper-parameters (the module's `parameters` dict) ----------
CHAR_VOCAB = 40          # char.vocab.size
POS_VOCAB  = 26          # fixed in the module (nn.Embedding(26, ...))
CHAR_EMB   = 8           # char.emb.size
POS_EMB    = 8           # poss.emb.size
CIN        = CHAR_EMB + POS_EMB          # conv input channels = 16
CONV_SIZE  = 32          # char.conv.size
ENC_SIZE   = CONV_SIZE // 2              # char.enc.size = 16
KW         = 3           # char.conv.width (odd -> "same" length)
DEPTH      = 2           # char.conv.depth
REPEAT     = 3           # char.repeat.convs (default)
B          = 2
L          = 16          # sequence (string) length

PAD = (KW // 2) * (2 ** DEPTH)           # max shift = half * max dilation = 4
NEMB = CHAR_VOCAB + POS_VOCAB            # 66 packed embedding rows
NEMB_AL = (NEMB + 7) // 8 * 8            # 72 (8-aligned slice; extra rows are 0)

# only split across the two v7x TensorCores when each chunk still yields
# MXU-height work (review heuristic: >= ~256 matmul rows per chunk)
MIN_ROWS_PER_CHUNK = 256


# --------------------- packed-weight buffer layout ----------------------------
def _build_layout():
    layout = {}
    r = 0

    def alloc(name, rows):
        nonlocal r
        layout[name] = r
        r += (rows + 7) // 8 * 8          # keep every section 8-sublane aligned

    alloc("emb", NEMB)                    # char (rows 0:40, cols 0:8) + pos (rows 40:66, cols 8:16)
    alloc("enc_w", KW * CIN)              # encoder + weight conv, packed (48, 33)
    alloc("enc_b", 1)
    for j in range(DEPTH):
        alloc(f"dil_w{j}", KW * CONV_SIZE)    # (96, 32)
        alloc(f"dil_b{j}", 1)
    alloc("blk_w", KW * CONV_SIZE)
    alloc("blk_b", 1)
    alloc("lin_w", CONV_SIZE)             # (32, 16)
    alloc("lin_b", 1)
    return layout, r


W_LAYOUT, W_ROWS = _build_layout()
W_COLS = CONV_SIZE + 1                    # 33 = 32 encoder chans + 1 weight-logit chan


# ------------------------------- kernel --------------------------------------
def chars2vec_kernel(ids_ref, w_ref, out_ref, scr_ref):
    # ids_ref block : (1, rs, 2) int32, rows already folded/padded per slab
    # scr_ref       : (rs + 2*PAD, CONV_SIZE) f32 zero-padded activation scratch
    rs = ids_ref.shape[1]                 # bc * (L + 2*PAD) folded rows
    bc = out_ref.shape[1]
    slab = rs // bc                       # L + 2*PAD
    seq = slab - 2 * PAD

    def wslice(name, rows, cols):
        r = W_LAYOUT[name]
        return w_ref[r:r + rows, 0:cols]

    # ---- hoisted weight loads (single packed VMEM buffer, static offsets) ----
    w_emb = wslice("emb", NEMB_AL, CIN)                         # (72, 16)
    w_enc = wslice("enc_w", KW * CIN, CONV_SIZE + 1)            # (48, 33)
    b_enc = wslice("enc_b", 1, CONV_SIZE + 1)                   # (1, 33)
    w_dil = [wslice(f"dil_w{j}", KW * CONV_SIZE, CONV_SIZE) for j in range(DEPTH)]
    b_dil = [wslice(f"dil_b{j}", 1, CONV_SIZE) for j in range(DEPTH)]
    w_blk = wslice("blk_w", KW * CONV_SIZE, CONV_SIZE)
    b_blk = wslice("blk_b", 1, CONV_SIZE)
    w_lin = wslice("lin_w", CONV_SIZE, ENC_SIZE)
    b_lin = wslice("lin_b", 1, ENC_SIZE)

    # ---- hoisted real-row mask: 1 on the seq rows of every batch slab --------
    rin = lax.broadcasted_iota(jnp.int32, (bc, slab, 1), 1).reshape(rs, 1)
    mask = jnp.logical_and(rin >= PAD, rin < PAD + seq).astype(jnp.float32)

    # ---- fused embedding gather: two-hot (rs, 72) @ packed table matmul ------
    ids = ids_ref[0]                                            # (rs, 2) int32
    ch = ids[:, 0:1]
    ps = ids[:, 1:2] + CHAR_VOCAB
    viota = lax.broadcasted_iota(jnp.int32, (rs, NEMB_AL), 1)
    twohot = jnp.logical_or(viota == ch, viota == ps).astype(jnp.float32)
    x = jnp.dot(twohot, w_emb, preferred_element_type=jnp.float32)   # (rs, 16)

    # ---- zero-padded activation scratch; halo rows stay exactly zero ---------
    scr_ref[...] = jnp.zeros_like(scr_ref)

    def conv(w, b, dil, cin):
        # 'same' dilated Conv1d as ONE im2col matmul over all rs folded rows.
        # Taps are static sublane slices of the padded scratch: no zero slabs,
        # no sublane concats, no (bc,L)->rows reshape.
        # (v7x alternative: KW accumulated matmuls into the MRB; im2col single
        #  matmul is the right form on v5e/v6e and is kept for all gens.)
        half = KW // 2
        taps = [scr_ref[PAD + (k - half) * dil: PAD + (k - half) * dil + rs, 0:cin]
                for k in range(KW)]
        patch = jnp.concatenate(taps, axis=-1)                  # (rs, KW*cin)
        return jnp.dot(patch, w, preferred_element_type=jnp.float32) + b

    # _char_encoding_conv and _char_weight_conv fused into one matmul
    # (both consume the same dropout'd == identity embeddings).
    scr_ref[PAD:PAD + rs, 0:CIN] = x * mask
    h = conv(w_enc, b_enc, 1, CIN)                              # (rs, 33)
    wl = h[:, CONV_SIZE:CONV_SIZE + 1]                          # (rs, 1) weight logits
    y = jnp.tanh(h[:, 0:CONV_SIZE])                             # (rs, 32)

    # repeated dilated conv blocks + block conv (tanh nonlinearity)
    for _ in range(REPEAT):
        for j in range(DEPTH):
            scr_ref[PAD:PAD + rs, 0:CONV_SIZE] = y * mask
            y = jnp.tanh(conv(w_dil[j], b_dil[j], 2 ** (j + 1), CONV_SIZE))
        scr_ref[PAD:PAD + rs, 0:CONV_SIZE] = y * mask
        y = jnp.tanh(conv(w_blk, b_blk, 1, CONV_SIZE))

    # non-legacy branch: softmax over sequence positions, attention pooling.
    # Only here do we unfold back to (bc, L, C) -- a single leading-dim split.
    y3 = y.reshape(bc, slab, CONV_SIZE)[:, PAD:PAD + seq, :]    # (bc, L, 32)
    wl3 = wl.reshape(bc, slab, 1)[:, PAD:PAD + seq, :]          # (bc, L, 1)
    m = jnp.max(wl3, axis=1, keepdims=True)
    e = jnp.exp(wl3 - m)
    attn = e / jnp.sum(e, axis=1, keepdims=True)                # exact softmax
    pooled = jnp.sum(y3 * attn, axis=1)                         # (bc, 32)

    # sem_layers: dropout(identity) -> Linear(C -> C//2) -> tanh
    out = jnp.tanh(jnp.dot(pooled, w_lin,
                           preferred_element_type=jnp.float32) + b_lin)
    out_ref[0] = out.astype(out_ref.dtype)                      # (bc, ENC_SIZE)


# ------------------------------ wrapper ---------------------------------------
def _conv_weight(w):
    """PyTorch Conv1d weight (Cout, Cin, KW) -> im2col layout (KW*Cin, Cout)."""
    co, ci, kw = w.shape
    return jnp.transpose(w, (2, 1, 0)).reshape(kw * ci, co)


def pack_params(p):
    """One-time (hoisted) repack of all weights/tables into one kernel buffer."""
    buf = jnp.zeros((W_ROWS, W_COLS), jnp.float32)

    def put(b, r, c, arr):
        arr = jnp.asarray(arr, jnp.float32)
        if arr.ndim == 1:
            arr = arr[None, :]
        return b.at[r:r + arr.shape[0], c:c + arr.shape[1]].set(arr)

    r = W_LAYOUT["emb"]
    buf = put(buf, r, 0, p["char_tab"])                          # rows 0:40, cols 0:8
    buf = put(buf, r + CHAR_VOCAB, CHAR_EMB, p["pos_tab"])       # rows 40:66, cols 8:16
    buf = put(buf, W_LAYOUT["enc_w"], 0, jnp.concatenate(
        [_conv_weight(p["wenc"]), _conv_weight(p["wwt"])], axis=1))   # (48, 33)
    buf = put(buf, W_LAYOUT["enc_b"], 0, jnp.concatenate([p["benc"], p["bwt"]]))
    for j in range(DEPTH):
        buf = put(buf, W_LAYOUT[f"dil_w{j}"], 0, _conv_weight(p["wdil"][j]))
        buf = put(buf, W_LAYOUT[f"dil_b{j}"], 0, p["bdil"][j])
    buf = put(buf, W_LAYOUT["blk_w"], 0, _conv_weight(p["wblk"]))
    buf = put(buf, W_LAYOUT["blk_b"], 0, p["bblk"])
    buf = put(buf, W_LAYOUT["lin_w"], 0, jnp.transpose(p["wlin"]))
    buf = put(buf, W_LAYOUT["lin_b"], 0, p["blin"])
    return {"wbuf": buf}


def chars2vec_forward(ids, packed):
    ids = ids.astype(jnp.int32)
    bn, ln, _ = ids.shape

    # Grid heuristic (perf feedback): a 2-way "parallel" split only pays on
    # v7x when each chunk still has MXU-height work; otherwise run ONE step
    # (on v5e/v6e the grid is a serial loop -> extra steps are pure overhead).
    chunks = 2 if (bn % 2 == 0 and (bn // 2) * ln >= MIN_ROWS_PER_CHUNK) else 1
    bc = bn // chunks
    slab = ln + 2 * PAD
    rs = bc * slab

    # Fold batch into 2-D rows with a PAD-row halo around every slab; halo
    # positions carry char/pos index 0 (padding rows of the embedding tables).
    ids_pad = jnp.pad(ids.reshape(chunks, bc, ln, 2),
                      ((0, 0), (0, 0), (PAD, PAD), (0, 0)))
    ids_exp = ids_pad.reshape(chunks, rs, 2)

    out = pl.pallas_call(
        chars2vec_kernel,
        out_shape=jax.ShapeDtypeStruct((chunks, bc, ENC_SIZE), jnp.float32),
        grid_spec=pltpu.PrefetchScalarGridSpec(
            num_scalar_prefetch=0,
            grid=(chunks,),
            in_specs=[
                pl.BlockSpec((1, rs, 2), lambda c: (c, 0, 0)),
                pl.BlockSpec((W_ROWS, W_COLS), lambda c: (0, 0)),
            ],
            out_specs=pl.BlockSpec((1, bc, ENC_SIZE), lambda c: (c, 0, 0)),
            scratch_shapes=[pltpu.VMEM((rs + 2 * PAD, CONV_SIZE), jnp.float32)],
        ),
        compiler_params=pltpu.CompilerParams(dimension_semantics=("parallel",)),
    )(ids_exp, packed["wbuf"])
    return out.reshape(bn, ENC_SIZE)


# --------------------------- deterministic params -----------------------------
def init_params(key):
    ks = jax.random.split(key, 12)

    def nrm(k, shape, scale):
        return jax.random.normal(k, shape, dtype=jnp.float32) * scale

    p = {}
    p["char_tab"] = nrm(ks[0], (CHAR_VOCAB, CHAR_EMB), 0.3).at[0].set(0.0)
    p["pos_tab"]  = nrm(ks[1], (POS_VOCAB, POS_EMB), 0.3).at[0].set(0.0)
    # PyTorch layouts
    p["wenc"] = nrm(ks[2], (CONV_SIZE, CIN, KW), 0.15)
    p["benc"] = nrm(ks[3], (CONV_SIZE,), 0.05)
    p["wdil"] = nrm(ks[4], (DEPTH, CONV_SIZE, CONV_SIZE, KW), 0.10)
    p["bdil"] = nrm(ks[5], (DEPTH, CONV_SIZE), 0.05)
    p["wblk"] = nrm(ks[6], (CONV_SIZE, CONV_SIZE, KW), 0.10)
    p["bblk"] = nrm(ks[7], (CONV_SIZE,), 0.05)
    p["wwt"]  = nrm(ks[8], (1, CIN, KW), 0.20)
    p["bwt"]  = nrm(ks[9], (1,), 0.05)
    p["wlin"] = nrm(ks[10], (ENC_SIZE, CONV_SIZE), 0.15)
    p["blin"] = nrm(ks[11], (ENC_SIZE,), 0.05)
    return p


# ---------------------------- pure-JAX reference -------------------------------
def ref_forward(ids, p):
    chars = ids[..., 0]
    poss = ids[..., 1]
    emb = jnp.concatenate([p["char_tab"][chars], p["pos_tab"][poss]], axis=-1)
    xm = jnp.transpose(emb, (0, 2, 1))                            # NCL like PyTorch

    def conv(x, w, b, dil, pad):
        y = lax.conv_general_dilated(
            x, w, window_strides=(1,), padding=[(pad, pad)],
            rhs_dilation=(dil,), dimension_numbers=("NCH", "OIH", "NCH"),
            precision=lax.Precision.HIGHEST)
        return y + b[None, :, None]

    y = jnp.tanh(conv(xm, p["wenc"], p["benc"], 1, KW // 2))
    for _ in range(REPEAT):
        for j in range(DEPTH):
            dil = 2 ** (j + 1)
            y = jnp.tanh(conv(y, p["wdil"][j], p["bdil"][j], dil, (KW // 2) * dil))
        y = jnp.tanh(conv(y, p["wblk"], p["bblk"], 1, KW // 2))
    wl = conv(xm, p["wwt"], p["bwt"], 1, KW // 2)                 # (B, 1, L)
    attn = jax.nn.softmax(jnp.transpose(wl, (0, 2, 1)), axis=1)   # (B, L, 1)
    pooled = jnp.einsum("bcl,blo->bco", y, attn,
                        precision=lax.Precision.HIGHEST)[..., 0]  # (B, C)
    return jnp.tanh(pooled @ p["wlin"].T + p["blin"])


# ----------------------------------- main --------------------------------------
if __name__ == "__main__":
    key = jax.random.PRNGKey(0)
    k_in, k_par = jax.random.split(key)
    kc, kp = jax.random.split(k_in)
    chars = jax.random.randint(kc, (B, L), 1, CHAR_VOCAB, dtype=jnp.int32)
    poss = jax.random.randint(kp, (B, L), 1, POS_VOCAB, dtype=jnp.int32)
    ids = jnp.stack([chars, poss], axis=-1)                       # (B, L, 2) int32

    params = init_params(k_par)
    packed = pack_params(params)          # hoisted, one-time weight repack

    fwd = jax.jit(chars2vec_forward)
    out = jax.block_until_ready(fwd(ids, packed))

    ref = ref_forward(ids, params)
    np.testing.assert_allclose(np.asarray(out), np.asarray(ref),
                               atol=3e-3, rtol=3e-3)
    print("KERNEL_OK")
</pallas_src>

<mosaic_0001>
module attributes {stable_mosaic.version = 11 : i64} {
  func.func @chars2vec_kernel(%arg0: i32, %arg1: memref<1x48x2xi32, #tpu.memory_space<vmem>>, %arg2: memref<480x33xf32, #tpu.memory_space<vmem>>, %arg3: memref<1x2x16xf32, #tpu.memory_space<vmem>>, %arg4: memref<56x32xf32, #tpu.memory_space<vmem>>) attributes {dimension_semantics = [#tpu.dimension_semantics<parallel>], iteration_bounds = array<i64: 1>, scalar_prefetch = 0 : i64, scratch_operands = 1 : i64, tpu.core_type = #tpu.core_type<tc>, window_params = [{transform_indices = @transform_0, window_bounds = array<i64: 1, 48, 2>}, {pipeline_mode = #tpu.pipeline_mode<synchronous>, transform_indices = @transform_1, window_bounds = array<i64: 480, 33>}, {transform_indices = @transform_2, window_bounds = array<i64: 1, 2, 16>}]} {
    %c0 = arith.constant 0 : index
    %c0_0 = arith.constant 0 : index
    %0 = vector.load %arg2[%c0, %c0_0] : memref<480x33xf32, #tpu.memory_space<vmem>>, vector<72x16xf32>
    %c72 = arith.constant 72 : index
    %c0_1 = arith.constant 0 : index
    %1 = vector.load %arg2[%c72, %c0_1] : memref<480x33xf32, #tpu.memory_space<vmem>>, vector<48x33xf32>
    %c120 = arith.constant 120 : index
    %c0_2 = arith.constant 0 : index
    %2 = vector.load %arg2[%c120, %c0_2] : memref<480x33xf32, #tpu.memory_space<vmem>>, vector<1x33xf32>
    %c128 = arith.constant 128 : index
    %c0_3 = arith.constant 0 : index
    %3 = vector.load %arg2[%c128, %c0_3] : memref<480x33xf32, #tpu.memory_space<vmem>>, vector<96x32xf32>
    %c232 = arith.constant 232 : index
    %c0_4 = arith.constant 0 : index
    %4 = vector.load %arg2[%c232, %c0_4] : memref<480x33xf32, #tpu.memory_space<vmem>>, vector<96x32xf32>
    %c224 = arith.constant 224 : index
    %c0_5 = arith.constant 0 : index
    %5 = vector.load %arg2[%c224, %c0_5] : memref<480x33xf32, #tpu.memory_space<vmem>>, vector<1x32xf32>
    %c328 = arith.constant 328 : index
    %c0_6 = arith.constant 0 : index
    %6 = vector.load %arg2[%c328, %c0_6] : memref<480x33xf32, #tpu.memory_space<vmem>>, vector<1x32xf32>
    %c336 = arith.constant 336 : index
    %c0_7 = arith.constant 0 : index
    %7 = vector.load %arg2[%c336, %c0_7] : memref<480x33xf32, #tpu.memory_space<vmem>>, vector<96x32xf32>
    %c432 = arith.constant 432 : index
    %c0_8 = arith.constant 0 : index
    %8 = vector.load %arg2[%c432, %c0_8] : memref<480x33xf32, #tpu.memory_space<vmem>>, vector<1x32xf32>
    %c440 = arith.constant 440 : index
    %c0_9 = arith.constant 0 : index
    %9 = vector.load %arg2[%c440, %c0_9] : memref<480x33xf32, #tpu.memory_space<vmem>>, vector<32x16xf32>
    %c472 = arith.constant 472 : index
    %c0_10 = arith.constant 0 : index
    %10 = vector.load %arg2[%c472, %c0_10] : memref<480x33xf32, #tpu.memory_space<vmem>>, vector<1x16xf32>
    %11 = tpu.iota {dimensions = array<i32: 1>} : vector<2x24x1xi32>
    %12 = vector.shape_cast %11 : vector<2x24x1xi32> to vector<48x1xi32>
    %c4_i32 = arith.constant 4 : i32
    %13 = vector.broadcast %c4_i32 : i32 to vector<48x1xi32>
    %14 = arith.cmpi sge, %12, %13 : vector<48x1xi32>
    %c20_i32 = arith.constant 20 : i32
    %15 = vector.broadcast %c20_i32 : i32 to vector<48x1xi32>
    %16 = arith.cmpi slt, %12, %15 : vector<48x1xi32>
    %17 = arith.andi %14, %16 : vector<48x1xi1>
    %18 = arith.extui %17 : vector<48x1xi1> to vector<48x1xi32>
    %19 = arith.sitofp %18 : vector<48x1xi32> to vector<48x1xf32>
    %c0_11 = arith.constant 0 : index
    %c0_12 = arith.constant 0 : index
    %c0_13 = arith.constant 0 : index
    %20 = vector.load %arg1[%c0_11, %c0_12, %c0_13] : memref<1x48x2xi32, #tpu.memory_space<vmem>>, vector<1x48x2xi32>
    %21 = vector.shape_cast %20 : vector<1x48x2xi32> to vector<48x2xi32>
    %22 = vector.extract_strided_slice %21 {offsets = [0, 0], sizes = [48, 1], strides = [1, 1]} : vector<48x2xi32> to vector<48x1xi32>
    %23 = vector.extract_strided_slice %21 {offsets = [0, 1], sizes = [48, 1], strides = [1, 1]} : vector<48x2xi32> to vector<48x1xi32>
    %c40_i32 = arith.constant 40 : i32
    %24 = vector.broadcast %c40_i32 : i32 to vector<48x1xi32>
    %25 = arith.addi %23, %24 : vector<48x1xi32>
    %26 = tpu.iota {dimensions = array<i32: 1>} : vector<48x72xi32>
    %27 = vector.broadcast %22 : vector<48x1xi32> to vector<48x72xi32>
    %28 = arith.cmpi eq, %26, %27 : vector<48x72xi32>
    %29 = vector.broadcast %25 : vector<48x1xi32> to vector<48x72xi32>
    %30 = arith.cmpi eq, %26, %29 : vector<48x72xi32>
    %31 = arith.ori %28, %30 : vector<48x72xi1>
    %32 = arith.extui %31 : vector<48x72xi1> to vector<48x72xi32>
    %33 = arith.sitofp %32 : vector<48x72xi32> to vector<48x72xf32>
    %cst = arith.constant dense<0.000000e+00> : vector<48x16xf32>
    %34 = tpu.matmul %33, %0, %cst {dimension_numbers = #tpu.dot_dimension_numbers<[1], [0], [0], [1], [0, 0, 1, 1], [], []>} : vector<48x72xf32>, vector<72x16xf32>, vector<48x16xf32> -> vector<48x16xf32>
    %cst_14 = arith.constant 0.000000e+00 : f32
    %35 = vector.broadcast %cst_14 : f32 to vector<56x32xf32>
    %c0_15 = arith.constant 0 : index
    %c0_16 = arith.constant 0 : index
    %36 = vector.load %arg4[%c0_15, %c0_16] : memref<56x32xf32, #tpu.memory_space<vmem>>, vector<56x32xf32>
    tpu.vector_store %arg4[%c0_15, %c0_16], %35 {strides = array<i32>} : memref<56x32xf32, #tpu.memory_space<vmem>>, vector<56x32xf32>,
    %37 = vector.broadcast %19 : vector<48x1xf32> to vector<48x16xf32>
    %38 = arith.mulf %34, %37 : vector<48x16xf32>
    %c4 = arith.constant 4 : index
    %c0_17 = arith.constant 0 : index
    %39 = vector.load %arg4[%c4, %c0_17] : memref<56x32xf32, #tpu.memory_space<vmem>>, vector<48x16xf32>
    tpu.vector_store %arg4[%c4, %c0_17], %38 {strides = array<i32>} : memref<56x32xf32, #tpu.memory_space<vmem>>, vector<48x16xf32>,
    %c3 = arith.constant 3 : index
    %c0_18 = arith.constant 0 : index
    %40 = vector.load %arg4[%c3, %c0_18] : memref<56x32xf32, #tpu.memory_space<vmem>>, vector<48x16xf32>
    %c4_19 = arith.constant 4 : index
    %c0_20 = arith.constant 0 : index
    %41 = vector.load %arg4[%c4_19, %c0_20] : memref<56x32xf32, #tpu.memory_space<vmem>>, vector<48x16xf32>
    %c5 = arith.constant 5 : index
    %c0_21 = arith.constant 0 : index
    %42 = vector.load %arg4[%c5, %c0_21] : memref<56x32xf32, #tpu.memory_space<vmem>>, vector<48x16xf32>
    %43 = tpu.concatenate %40, %41, %42 in 1 : vector<48x16xf32>, vector<48x16xf32>, vector<48x16xf32> -> vector<48x48xf32>
    %cst_22 = arith.constant dense<0.000000e+00> : vector<48x33xf32>
    %44 = tpu.matmul %43, %1, %cst_22 {dimension_numbers = #tpu.dot_dimension_numbers<[1], [0], [0], [1], [0, 0, 1, 1], [], []>} : vector<48x48xf32>, vector<48x33xf32>, vector<48x33xf32> -> vector<48x33xf32>
    %45 = vector.broadcast %2 : vector<1x33xf32> to vector<48x33xf32>
    %46 = arith.addf %44, %45 : vector<48x33xf32>
    %47 = vector.extract_strided_slice %46 {offsets = [0, 32], sizes = [48, 1], strides = [1, 1]} : vector<48x33xf32> to vector<48x1xf32>
    %48 = vector.extract_strided_slice %46 {offsets = [0, 0], sizes = [48, 32], strides = [1, 1]} : vector<48x33xf32> to vector<48x32xf32>
    %49 = math.tanh %48 : vector<48x32xf32>
    %50 = vector.broadcast %19 : vector<48x1xf32> to vector<48x32xf32>
    %51 = arith.mulf %49, %50 : vector<48x32xf32>
    %c4_23 = arith.constant 4 : index
    %c0_24 = arith.constant 0 : index
    %52 = vector.load %arg4[%c4_23, %c0_24] : memref<56x32xf32, #tpu.memory_space<vmem>>, vector<48x32xf32>
    tpu.vector_store %arg4[%c4_23, %c0_24], %51 {strides = array<i32>} : memref<56x32xf32, #tpu.memory_space<vmem>>, vector<48x32xf32>,
    %c2 = arith.constant 2 : index
    %c0_25 = arith.constant 0 : index
    %53 = vector.load %arg4[%c2, %c0_25] : memref<56x32xf32, #tpu.memory_space<vmem>>, vector<48x32xf32>
    %c4_26 = arith.constant 4 : index
    %c0_27 = arith.constant 0 : index
    %54 = vector.load %arg4[%c4_26, %c0_27] : memref<56x32xf32, #tpu.memory_space<vmem>>, vector<48x32xf32>
    %c6 = arith.constant 6 : index
    %c0_28 = arith.constant 0 : index
    %55 = vector.load %arg4[%c6, %c0_28] : memref<56x32xf32, #tpu.memory_space<vmem>>, vector<48x32xf32>
    %56 = tpu.concatenate %53, %54, %55 in 1 : vector<48x32xf32>, vector<48x32xf32>, vector<48x32xf32> -> vector<48x96xf32>
    %cst_29 = arith.constant dense<0.000000e+00> : vector<48x32xf32>
    %57 = tpu.matmul %56, %3, %cst_29 {dimension_numbers = #tpu.dot_dimension_numbers<[1], [0], [0], [1], [0, 0, 1, 1], [], []>} : vector<48x96xf32>, vector<96x32xf32>, vector<48x32xf32> -> vector<48x32xf32>
    %58 = vector.broadcast %5 : vector<1x32xf32> to vector<48x32xf32>
    %59 = arith.addf %57, %58 : vector<48x32xf32>
    %60 = math.tanh %59 : vector<48x32xf32>
    %61 = vector.broadcast %19 : vector<48x1xf32> to vector<48x32xf32>
    %62 = arith.mulf %60, %61 : vector<48x32xf32>
    %c4_30 = arith.constant 4 : index
    %c0_31 = arith.constant 0 : index
    %63 = vector.load %arg4[%c4_30, %c0_31] : memref<56x32xf32, #tpu.memory_space<vmem>>, vector<48x32xf32>
    tpu.vector_store %arg4[%c4_30, %c0_31], %62 {strides = array<i32>} : memref<56x32xf32, #tpu.memory_space<vmem>>, vector<48x32xf32>,
    %c0_32 = arith.constant 0 : index
    %c0_33 = arith.constant 0 : index
    %64 = vector.load %arg4[%c0_32, %c0_33] : memref<56x32xf32, #tpu.memory_space<vmem>>, vector<48x32xf32>
    %c4_34 = arith.constant 4 : index
    %c0_35 = arith.constant 0 : index
    %65 = vector.load %arg4[%c4_34, %c0_35] : memref<56x32xf32, #tpu.memory_space<vmem>>, vector<48x32xf32>
    %c8 = arith.constant 8 : index
    %c0_36 = arith.constant 0 : index
    %66 = vector.load %arg4[%c8, %c0_36] : memref<56x32xf32, #tpu.memory_space<vmem>>, vector<48x32xf32>
    %67 = tpu.concatenate %64, %65, %66 in 1 : vector<48x32xf32>, vector<48x32xf32>, vector<48x32xf32> -> vector<48x96xf32>
    %cst_37 = arith.constant dense<0.000000e+00> : vector<48x32xf32>
    %68 = tpu.matmul %67, %4, %cst_37 {dimension_numbers = #tpu.dot_dimension_numbers<[1], [0], [0], [1], [0, 0, 1, 1], [], []>} : vector<48x96xf32>, vector<96x32xf32>, vector<48x32xf32> -> vector<48x32xf32>
    %69 = vector.broadcast %6 : vector<1x32xf32> to vector<48x32xf32>
    %70 = arith.addf %68, %69 : vector<48x32xf32>
    %71 = math.tanh %70 : vector<48x32xf32>
    %72 = vector.broadcast %19 : vector<48x1xf32> to vector<48x32xf32>
    %73 = arith.mulf %71, %72 : vector<48x32xf32>
    %c4_38 = arith.constant 4 : index
    %c0_39 = arith.constant 0 : index
    %74 = vector.load %arg4[%c4_38, %c0_39] : memref<56x32xf32, #tpu.memory_space<vmem>>, vector<48x32xf32>
    tpu.vector_store %arg4[%c4_38, %c0_39], %73 {strides = array<i32>} : memref<56x32xf32, #tpu.memory_space<vmem>>, vector<48x32xf32>,
    %c3_40 = arith.constant 3 : index
    %c0_41 = arith.constant 0 : index
    %75 = vector.load %arg4[%c3_40, %c0_41] : memref<56x32xf32, #tpu.memory_space<vmem>>, vector<48x32xf32>
    %c4_42 = arith.constant 4 : index
    %c0_43 = arith.constant 0 : index
    %76 = vector.load %arg4[%c4_42, %c0_43] : memref<56x32xf32, #tpu.memory_space<vmem>>, vector<48x32xf32>
    %c5_44 = arith.constant 5 : index
    %c0_45 = arith.constant 0 : index
    %77 = vector.load %arg4[%c5_44, %c0_45] : memref<56x32xf32, #tpu.memory_space<vmem>>, vector<48x32xf32>
    %78 = tpu.concatenate %75, %76, %77 in 1 : vector<48x32xf32>, vector<48x32xf32>, vector<48x32xf32> -> vector<48x96xf32>
    %cst_46 = arith.constant dense<0.000000e+00> : vector<48x32xf32>
    %79 = tpu.matmul %78, %7, %cst_46 {dimension_numbers = #tpu.dot_dimension_numbers<[1], [0], [0], [1], [0, 0, 1, 1], [], []>} : vector<48x96xf32>, vector<96x32xf32>, vector<48x32xf32> -> vector<48x32xf32>
    %80 = vector.broadcast %8 : vector<1x32xf32> to vector<48x32xf32>
    %81 = arith.addf %79, %80 : vector<48x32xf32>
    %82 = math.tanh %81 : vector<48x32xf32>
    %83 = vector.broadcast %19 : vector<48x1xf32> to vector<48x32xf32>
    %84 = arith.mulf %82, %83 : vector<48x32xf32>
    %c4_47 = arith.constant 4 : index
    %c0_48 = arith.constant 0 : index
    %85 = vector.load %arg4[%c4_47, %c0_48] : memref<56x32xf32, #tpu.memory_space<vmem>>, vector<48x32xf32>
    tpu.vector_store %arg4[%c4_47, %c0_48], %84 {strides = array<i32>} : memref<56x32xf32, #tpu.memory_space<vmem>>, vector<48x32xf32>,
    %c2_49 = arith.constant 2 : index
    %c0_50 = arith.constant 0 : index
    %86 = vector.load %arg4[%c2_49, %c0_50] : memref<56x32xf32, #tpu.memory_space<vmem>>, vector<48x32xf32>
    %c4_51 = arith.constant 4 : index
    %c0_52 = arith.constant 0 : index
    %87 = vector.load %arg4[%c4_51, %c0_52] : memref<56x32xf32, #tpu.memory_space<vmem>>, vector<48x32xf32>
    %c6_53 = arith.constant 6 : index
    %c0_54 = arith.constant 0 : index
    %88 = vector.load %arg4[%c6_53, %c0_54] : memref<56x32xf32, #tpu.memory_space<vmem>>, vector<48x32xf32>
    %89 = tpu.concatenate %86, %87, %88 in 1 : vector<48x32xf32>, vector<48x32xf32>, vector<48x32xf32> -> vector<48x96xf32>
    %cst_55 = arith.constant dense<0.000000e+00> : vector<48x32xf32>
    %90 = tpu.matmul %89, %3, %cst_55 {dimension_numbers = #tpu.dot_dimension_numbers<[1], [0], [0], [1], [0, 0, 1, 1], [], []>} : vector<48x96xf32>, vector<96x32xf32>, vector<48x32xf32> -> vector<48x32xf32>
    %91 = vector.broadcast %5 : vector<1x32xf32> to vector<48x32xf32>
    %92 = arith.addf %90, %91 : vector<48x32xf32>
    %93 = math.tanh %92 : vector<48x32xf32>
    %94 = vector.broadcast %19 : vector<48x1xf32> to vector<48x32xf32>
    %95 = arith.mulf %93, %94 : vector<48x32xf32>
    %c4_56 = arith.constant 4 : index
    %c0_57 = arith.constant 0 : index
    %96 = vector.load %arg4[%c4_56, %c0_57] : memref<56x32xf32, #tpu.memory_space<vmem>>, vector<48x32xf32>
    tpu.vector_store %arg4[%c4_56, %c0_57], %95 {strides = array<i32>} : memref<56x32xf32, #tpu.memory_space<vmem>>, vector<48x32xf32>,
    %c0_58 = arith.constant 0 : index
    %c0_59 = arith.constant 0 : index
    %97 = vector.load %arg4[%c0_58, %c0_59] : memref<56x32xf32, #tpu.memory_space<vmem>>, vector<48x32xf32>
    %c4_60 = arith.constant 4 : index
    %c0_61 = arith.constant 0 : index
    %98 = vector.load %arg4[%c4_60, %c0_61] : memref<56x32xf32, #tpu.memory_space<vmem>>, vector<48x32xf32>
    %c8_62 = arith.constant 8 : index
    %c0_63 = arith.constant 0 : index
    %99 = vector.load %arg4[%c8_62, %c0_63] : memref<56x32xf32, #tpu.memory_space<vmem>>, vector<48x32xf32>
    %100 = tpu.concatenate %97, %98, %99 in 1 : vector<48x32xf32>, vector<48x32xf32>, vector<48x32xf32> -> vector<48x96xf32>
    %cst_64 = arith.constant dense<0.000000e+00> : vector<48x32xf32>
    %101 = tpu.matmul %100, %4, %cst_64 {dimension_numbers = #tpu.dot_dimension_numbers<[1], [0], [0], [1], [0, 0, 1, 1], [], []>} : vector<48x96xf32>, vector<96x32xf32>, vector<48x32xf32> -> vector<48x32xf32>
    %102 = vector.broadcast %6 : vector<1x32xf32> to vector<48x32xf32>
    %103 = arith.addf %101, %102 : vector<48x32xf32>
    %104 = math.tanh %103 : vector<48x32xf32>
    %105 = vector.broadcast %19 : vector<48x1xf32> to vector<48x32xf32>
    %106 = arith.mulf %104, %105 : vector<48x32xf32>
    %c4_65 = arith.constant 4 : index
    %c0_66 = arith.constant 0 : index
    %107 = vector.load %arg4[%c4_65, %c0_66] : memref<56x32xf32, #tpu.memory_space<vmem>>, vector<48x32xf32>
    tpu.vector_store %arg4[%c4_65, %c0_66], %106 {strides = array<i32>} : memref<56x32xf32, #tpu.memory_space<vmem>>, vector<48x32xf32>,
    %c3_67 = arith.constant 3 : index
    %c0_68 = arith.constant 0 : index
    %108 = vector.load %arg4[%c3_67, %c0_68] : memref<56x32xf32, #tpu.memory_space<vmem>>, vector<48x32xf32>
    %c4_69 = arith.constant 4 : index
    %c0_70 = arith.constant 0 : index
    %109 = vector.load %arg4[%c4_69, %c0_70] : memref<56x32xf32, #tpu.memory_space<vmem>>, vector<48x32xf32>
    %c5_71 = arith.constant 5 : index
    %c0_72 = arith.constant 0 : index
    %110 = vector.load %arg4[%c5_71, %c0_72] : memref<56x32xf32, #tpu.memory_space<vmem>>, vector<48x32xf32>
    %111 = tpu.concatenate %108, %109, %110 in 1 : vector<48x32xf32>, vector<48x32xf32>, vector<48x32xf32> -> vector<48x96xf32>
    %cst_73 = arith.constant dense<0.000000e+00> : vector<48x32xf32>
    %112 = tpu.matmul %111, %7, %cst_73 {dimension_numbers = #tpu.dot_dimension_numbers<[1], [0], [0], [1], [0, 0, 1, 1], [], []>} : vector<48x96xf32>, vector<96x32xf32>, vector<48x32xf32> -> vector<48x32xf32>
    %113 = vector.broadcast %8 : vector<1x32xf32> to vector<48x32xf32>
    %114 = arith.addf %112, %113 : vector<48x32xf32>
    %115 = math.tanh %114 : vector<48x32xf32>
    %116 = vector.broadcast %19 : vector<48x1xf32> to vector<48x32xf32>
    %117 = arith.mulf %115, %116 : vector<48x32xf32>
    %c4_74 = arith.constant 4 : index
    %c0_75 = arith.constant 0 : index
    %118 = vector.load %arg4[%c4_74, %c0_75] : memref<56x32xf32, #tpu.memory_space<vmem>>, vector<48x32xf32>
    tpu.vector_store %arg4[%c4_74, %c0_75], %117 {strides = array<i32>} : memref<56x32xf32, #tpu.memory_space<vmem>>, vector<48x32xf32>,
    %c2_76 = arith.constant 2 : index
    %c0_77 = arith.constant 0 : index
    %119 = vector.load %arg4[%c2_76, %c0_77] : memref<56x32xf32, #tpu.memory_space<vmem>>, vector<48x32xf32>
    %c4_78 = arith.constant 4 : index
    %c0_79 = arith.constant 0 : index
    %120 = vector.load %arg4[%c4_78, %c0_79] : memref<56x32xf32, #tpu.memory_space<vmem>>, vector<48x32xf32>
    %c6_80 = arith.constant 6 : index
    %c0_81 = arith.constant 0 : index
    %121 = vector.load %arg4[%c6_80, %c0_81] : memref<56x32xf32, #tpu.memory_space<vmem>>, vector<48x32xf32>
    %122 = tpu.concatenate %119, %120, %121 in 1 : vector<48x32xf32>, vector<48x32xf32>, vector<48x32xf32> -> vector<48x96xf32>
    %cst_82 = arith.constant dense<0.000000e+00> : vector<48x32xf32>
    %123 = tpu.matmul %122, %3, %cst_82 {dimension_numbers = #tpu.dot_dimension_numbers<[1], [0], [0], [1], [0, 0, 1, 1], [], []>} : vector<48x96xf32>, vector<96x32xf32>, vector<48x32xf32> -> vector<48x32xf32>
    %124 = vector.broadcast %5 : vector<1x32xf32> to vector<48x32xf32>
    %125 = arith.addf %123, %124 : vector<48x32xf32>
    %126 = math.tanh %125 : vector<48x32xf32>
    %127 = vector.broadcast %19 : vector<48x1xf32> to vector<48x32xf32>
    %128 = arith.mulf %126, %127 : vector<48x32xf32>
    %c4_83 = arith.constant 4 : index
    %c0_84 = arith.constant 0 : index
    %129 = vector.load %arg4[%c4_83, %c0_84] : memref<56x32xf32, #tpu.memory_space<vmem>>, vector<48x32xf32>
    tpu.vector_store %arg4[%c4_83, %c0_84], %128 {strides = array<i32>} : memref<56x32xf32, #tpu.memory_space<vmem>>, vector<48x32xf32>,
    %c0_85 = arith.constant 0 : index
    %c0_86 = arith.constant 0 : index
    %130 = vector.load %arg4[%c0_85, %c0_86] : memref<56x32xf32, #tpu.memory_space<vmem>>, vector<48x32xf32>
    %c4_87 = arith.constant 4 : index
    %c0_88 = arith.constant 0 : index
    %131 = vector.load %arg4[%c4_87, %c0_88] : memref<56x32xf32, #tpu.memory_space<vmem>>, vector<48x32xf32>
    %c8_89 = arith.constant 8 : index
    %c0_90 = arith.constant 0 : index
    %132 = vector.load %arg4[%c8_89, %c0_90] : memref<56x32xf32, #tpu.memory_space<vmem>>, vector<48x32xf32>
    %133 = tpu.concatenate %130, %131, %132 in 1 : vector<48x32xf32>, vector<48x32xf32>, vector<48x32xf32> -> vector<48x96xf32>
    %cst_91 = arith.constant dense<0.000000e+00> : vector<48x32xf32>
    %134 = tpu.matmul %133, %4, %cst_91 {dimension_numbers = #tpu.dot_dimension_numbers<[1], [0], [0], [1], [0, 0, 1, 1], [], []>} : vector<48x96xf32>, vector<96x32xf32>, vector<48x32xf32> -> vector<48x32xf32>
    %135 = vector.broadcast %6 : vector<1x32xf32> to vector<48x32xf32>
    %136 = arith.addf %134, %135 : vector<48x32xf32>
    %137 = math.tanh %136 : vector<48x32xf32>
    %138 = vector.broadcast %19 : vector<48x1xf32> to vector<48x32xf32>
    %139 = arith.mulf %137, %138 : vector<48x32xf32>
    %c4_92 = arith.constant 4 : index
    %c0_93 = arith.constant 0 : index
    %140 = vector.load %arg4[%c4_92, %c0_93] : memref<56x32xf32, #tpu.memory_space<vmem>>, vector<48x32xf32>
    tpu.vector_store %arg4[%c4_92, %c0_93], %139 {strides = array<i32>} : memref<56x32xf32, #tpu.memory_space<vmem>>, vector<48x32xf32>,
    %c3_94 = arith.constant 3 : index
    %c0_95 = arith.constant 0 : index
    %141 = vector.load %arg4[%c3_94, %c0_95] : memref<56x32xf32, #tpu.memory_space<vmem>>, vector<48x32xf32>
    %c4_96 = arith.constant 4 : index
    %c0_97 = arith.constant 0 : index
    %142 = vector.load %arg4[%c4_96, %c0_97] : memref<56x32xf32, #tpu.memory_space<vmem>>, vector<48x32xf32>
    %c5_98 = arith.constant 5 : index
    %c0_99 = arith.constant 0 : index
    %143 = vector.load %arg4[%c5_98, %c0_99] : memref<56x32xf32, #tpu.memory_space<vmem>>, vector<48x32xf32>
    %144 = tpu.concatenate %141, %142, %143 in 1 : vector<48x32xf32>, vector<48x32xf32>, vector<48x32xf32> -> vector<48x96xf32>
    %cst_100 = arith.constant dense<0.000000e+00> : vector<48x32xf32>
    %145 = tpu.matmul %144, %7, %cst_100 {dimension_numbers = #tpu.dot_dimension_numbers<[1], [0], [0], [1], [0, 0, 1, 1], [], []>} : vector<48x96xf32>, vector<96x32xf32>, vector<48x32xf32> -> vector<48x32xf32>
    %146 = vector.broadcast %8 : vector<1x32xf32> to vector<48x32xf32>
    %147 = arith.addf %145, %146 : vector<48x32xf32>
    %148 = math.tanh %147 : vector<48x32xf32>
    %149 = vector.shape_cast %148 : vector<48x32xf32> to vector<2x24x32xf32>
    %150 = vector.extract_strided_slice %149 {offsets = [0, 4, 0], sizes = [2, 16, 32], strides = [1, 1, 1]} : vector<2x24x32xf32> to vector<2x16x32xf32>
    %151 = vector.shape_cast %47 : vector<48x1xf32> to vector<2x24x1xf32>
    %152 = vector.extract_strided_slice %151 {offsets = [0, 4, 0], sizes = [2, 16, 1], strides = [1, 1, 1]} : vector<2x24x1xf32> to vector<2x16x1xf32>
    %cst_101 = arith.constant dense<0xFF800000> : vector<2x1xf32>
    %153 = vector.multi_reduction <maximumf>, %152, %cst_101 [1] : vector<2x16x1xf32> to vector<2x1xf32>
    %154 = vector.shape_cast %153 : vector<2x1xf32> to vector<2x1x1xf32>
    %155 = vector.broadcast %154 : vector<2x1x1xf32> to vector<2x16x1xf32>
    %156 = arith.subf %152, %155 : vector<2x16x1xf32>
    %157 = math.exp %156 : vector<2x16x1xf32>
    %cst_102 = arith.constant dense<0.000000e+00> : vector<2x1xf32>
    %158 = vector.multi_reduction <add>, %157, %cst_102 [1] : vector<2x16x1xf32> to vector<2x1xf32>
    %159 = vector.shape_cast %158 : vector<2x1xf32> to vector<2x1x1xf32>
    %160 = vector.broadcast %159 : vector<2x1x1xf32> to vector<2x16x1xf32>
    %161 = arith.divf %157, %160 : vector<2x16x1xf32>
    %162 = vector.broadcast %161 : vector<2x16x1xf32> to vector<2x16x32xf32>
    %163 = arith.mulf %150, %162 : vector<2x16x32xf32>
    %cst_103 = arith.constant dense<0.000000e+00> : vector<2x32xf32>
    %164 = vector.multi_reduction <add>, %163, %cst_103 [1] : vector<2x16x32xf32> to vector<2x32xf32>
    %cst_104 = arith.constant dense<0.000000e+00> : vector<2x16xf32>
    %165 = tpu.matmul %164, %9, %cst_104 {dimension_numbers = #tpu.dot_dimension_numbers<[1], [0], [0], [1], [0, 0, 1, 1], [], []>} : vector<2x32xf32>, vector<32x16xf32>, vector<2x16xf32> -> vector<2x16xf32>
    %166 = vector.broadcast %10 : vector<1x16xf32> to vector<2x16xf32>
    %167 = arith.addf %165, %166 : vector<2x16xf32>
    %168 = math.tanh %167 : vector<2x16xf32>
    %c0_105 = arith.constant 0 : index
    %c0_106 = arith.constant 0 : index
    %c0_107 = arith.constant 0 : index
    %169 = vector.load %arg3[%c0_105, %c0_106, %c0_107] : memref<1x2x16xf32, #tpu.memory_space<vmem>>, vector<1x2x16xf32>
    %170 = vector.shape_cast %169 : vector<1x2x16xf32> to vector<2x16xf32>
    %171 = vector.shape_cast %168 : vector<2x16xf32> to vector<1x2x16xf32>
    tpu.vector_store %arg3[%c0_105, %c0_106, %c0_107], %171 {strides = array<i32>} : memref<1x2x16xf32, #tpu.memory_space<vmem>>, vector<1x2x16xf32>,
    return
  }
  func.func @transform_0(%arg0: i32) -> (i32, i32, i32) {
    %c0_i32 = arith.constant 0 : i32
    %c0_i32_0 = arith.constant 0 : i32
    %c0_i32_1 = arith.constant 0 : i32
    return %arg0, %c0_i32, %c0_i32_0 : i32, i32, i32
  }
  func.func @transform_1(%arg0: i32) -> (i32, i32) {
    %c0_i32 = arith.constant 0 : i32
    %c0_i32_0 = arith.constant 0 : i32
    %c0_i32_1 = arith.constant 0 : i32
    return %c0_i32, %c0_i32_0 : i32, i32
  }
  func.func @transform_2(%arg0: i32) -> (i32, i32, i32) {
    %c0_i32 = arith.constant 0 : i32
    %c0_i32_0 = arith.constant 0 : i32
    %c0_i32_1 = arith.constant 0 : i32
    return %arg0, %c0_i32, %c0_i32_0 : i32, i32, i32
  }
}

</mosaic_0001>

<bundles_post_ra>
// kernel: chars2vec_forward.1
= control target key start
LH: loop header
LB: loop body
LE: loop exit
PB: predicated region body
PF: predicated region fallthrough
CT: control target
= control target key end

     0   :  { %v2232_v2 = vmov 0   ;;  %s3091_s0 = inlined_call_operand.vmem [shape: s32[1,48,2], index: 0, kind: input, shape index: {}]   ;;  %s3092_s1 = inlined_call_operand.vmem [shape: f32[480,33], index: 1, kind: input, shape index: {}]   ;;  %s3093_s2 = inlined_call_operand.hbm [shape: f32[1,2,16], index: 2, kind: output, shape index: {}]  }
   0x1   :  { %v92_v0 = vld [vmem:[%s3091_s0 + $0x8] sm:$0xff]  ;;  %v91_v1 = vld [vmem:[%s3091_s0] sm:$0xff]  ;;  %2049 = vset.pattern.permute.xlu1 %v2232_v2  ;;  %2047 = vset.pattern.permute.xlu0 %v2232_v2  ;;  %v93_v3 = vld [vmem:[%s3091_s0 + $0x10] sm:$0xff] }
   0x2   :  { %109 = vperm.xlu1 %2049, %v92_v0   ;;  %106 = vperm.xlu0 %2047, %v91_v1  }
   0x3   :  { %2051 = vset.pattern.permute.xlu2 %v2232_v2 }
   0x4   :  { %112 = vperm.xlu2 %2051, %v93_v3  }
   0x5   :  { %7 = vsyncpa [#allocation4], 0  ;;  %v20_v4 = vld [vmem:[%s3092_s1 + $0x40] sm:$0xff]  ;;  %v19_v5 = vld [vmem:[%s3092_s1 + $0x38] sm:$0xff]  ;;  %v98_v6 = vadd.s32 40, %v92_v0  ;;  %v97_v7 = vadd.s32 40, %v91_v1  ;;  %v72_v25 = vlaneseq }
   0x6   :  { %197 = vmatpush.msra.mxu0 %v20_v4  ;;  %v99_v8 = vadd.s32 40, %v93_v3  ;;  %v2233_v9 = vmov 1   ;;  %v94_v10 = vld [vmem:[%s3091_s0 + $0x18] sm:$0xff]  ;;  %v95_v12 = vld [vmem:[%s3091_s0 + $0x20] sm:$0xff]  ;;  %v96_v14 = vld [vmem:[%s3091_s0 + $0x28] sm:$0xff]  ;;  %vm171_vm2 = vcmask 588800  }
   0x7   :  { %v100_v11 = vadd.s32 40, %v94_v10  ;;  %v101_v13 = vadd.s32 40, %v95_v12  ;;  %v102_v15 = vadd.s32 40, %v96_v14  ;;  %v18_v16 = vld [vmem:[%s3092_s1 + $0x30] sm:$0xff]  ;;  %v17_v17 = vld [vmem:[%s3092_s1 + $0x28] sm:$0xff]  ;;  %v16_v18 = vld [vmem:[%s3092_s1 + $0x20] sm:$0xff] }
   0x8   :  { %198 = vmatpush.msra.mxu0 %v19_v5  ;;  %v15_v19 = vld [vmem:[%s3092_s1 + $0x18] sm:$0xff]  ;;  %v14_v20 = vld [vmem:[%s3092_s1 + $0x10] sm:$0xff]  ;;  %v13_v21 = vld [vmem:[%s3092_s1 + $0x8] sm:$0xff]  ;;  %v104_v26 = vand.u32 127, %v72_v25  ;;  %v2234_v30 = vmov 0.0   ;;  %v73_v44 = vshrl.u32 %v72_v25, 7 }
   0x9   :  { %v12_v22 = vld [vmem:[%s3092_s1] sm:$0xff]  ;;  %s2235_s10 = smov 16   ;;  %s2236_s11 = smov 32  }
   0xa   :  { %2050 = vset.pattern.permute.xlu1 %v2233_v9  ;;  %2048 = vset.pattern.permute.xlu0 %v2233_v9  ;;  %v75_v48 = vadd.s32 16, %v73_v44  ;;  %s2237_s26 = smov 64   ;;  %s2239_s9 = smov [#allocation3]  }
   0xb   :  { %133 = vperm.xlu1 %2050, %v98_v6   ;;  %130 = vperm.xlu0 %2048, %v97_v7   ;;  %v26_v6 = vld [vmem:[%s3092_s1 + $0x70] sm:$0xff]  ;;  %v25_v7 = vld [vmem:[%s3092_s1 + $0x68] sm:$0xff]  ;;  %s1943_s14 = sshll.u32 %s3093_s2, 4  ;;  %s1944_s14 = int_to_ptr.hbm [resolvable:$true] %s1943_s14 }
   0xc   :  { %2052 = vset.pattern.permute.xlu2 %v2233_v9  ;;  %199 = vmatpush.msra.mxu0 %v18_v16 }
   0xd   :  { %136 = vperm.xlu2 %2052, %v99_v8   ;;  %354 = vmatpush.msra.mxu1 %v26_v6  ;;  %v24_v8 = vld [vmem:[%s3092_s1 + $0x60] sm:$0xff] }
   0xe   :  { %200 = vmatpush.msra.mxu0 %v17_v17 }
   0xf   :  { %355 = vmatpush.msra.mxu1 %v25_v7 }
  0x10   :  { %201 = vmatpush.msra.mxu0 %v16_v18 }
  0x11   :  { %356 = vmatpush.msra.mxu1 %v24_v8 }
  0x12   :  { %202 = vmatpush.msra.mxu0 %v15_v19 }
  0x13   :  { %2053 = vset.pattern.permute.xlu1 %v2232_v2  ;;  %2054 = vset.pattern.permute.xlu0 %v2232_v2 }
  0x14   :  { %115 = vperm.xlu1 %2053, %v94_v10   ;;  %118 = vperm.xlu0 %2054, %v95_v12   ;;  %v22_v10 = vld [vmem:[%s3092_s1 + $0x50] sm:$0xff] }
  0x15   :  { %139 = vperm.xlu2 %2052, %v100_v11   ;;  %203 = vmatpush.msra.mxu0 %v14_v20  ;;  %v21_v11 = vld [vmem:[%s3092_s1 + $0x48] sm:$0xff] }
  0x17   :  { %204 = vmatpush.msra.mxu0 %v13_v21 }
  0x19   :  { %205 = vmatpush.msra.mxu0 %v12_v22 }
  0x1c   :  { %2055 = vset.pattern.permute.xlu1 %v2233_v9  ;;  %v23_v9 = vld [vmem:[%s3092_s1 + $0x58] sm:$0xff] }
  0x1d   :  { %142 = vperm.xlu1 %2055, %v101_v13   ;;  %2056 = vset.pattern.permute.xlu2 %v2232_v2 }
  0x1e   :  { %121 = vperm.xlu2 %2056, %v96_v14   ;;  %357 = vmatpush.msra.mxu1 %v23_v9 }
  0x20   :  { %358 = vmatpush.msra.mxu1 %v22_v10 }
  0x22   :  { %359 = vmatpush.msra.mxu1 %v21_v11 }
  0x25   :  { %145 = vperm.xlu1 %2055, %v102_v15  }
  0x5e   :  { %v113_v27 = vpop.permute.xlu2 %112 }
  0x5f   :  { %vm125_vm7 = vcmp.eq.s32.totalorder %v104_v26, %v113_v27 }
  0x67   :  { %v137_v32 = vpop.permute.xlu2 %136 }
  0x68   :  { %vm149_vm8 = vcmp.eq.s32.totalorder %v104_v26, %v137_v32 }
  0x69   :  { %vm155_vm9 = vmor %vm125_vm7, %vm149_vm8  ;;  %vm325_vm7 = vcmask 392192   ;;  %vm1716_vm8 = vcmask 269572  }
  0x6a   :  { %v1956_v36 = vsel %vm155_vm9, 1.0, %v2234_v30  ;;  %vm1720_vm9 = vcmask 265472  }
  0x6f   :  { %v140_v35 = vpop.permute.xlu2 %139 }
  0x70   :  { %vm150_vm10 = vcmp.eq.s32.totalorder %v104_v26, %v140_v35 }
  0x74   :  { %v107_v23 = vpop.permute.xlu0 %106  ;;  %v110_v24 = vpop.permute.xlu1 %109 }
  0x75   :  { %vm123_vm1 = vcmp.eq.s32.totalorder %v104_v26, %v107_v23  ;;  %vm124_vm4 = vcmp.eq.s32.totalorder %v104_v26, %v110_v24 }
  0x78   :  { %v122_v41 = vpop.permute.xlu2 %121 }
  0x7d   :  { %v131_v28 = vpop.permute.xlu0 %130  ;;  %v134_v29 = vpop.permute.xlu1 %133 }
  0x7e   :  { %vm147_vm0 = vcmp.eq.s32.totalorder %v104_v26, %v131_v28  ;;  %vm148_vm5 = vcmp.eq.s32.totalorder %v104_v26, %v134_v29 }
  0x7f   :  { %vm153_vm3 = vmor %vm123_vm1, %vm147_vm0  ;;  %vm128_vm0 = vcmp.eq.s32.totalorder %v104_v26, %v122_v41 }
  0x80   :  { %v1954_v31 = vsel %vm153_vm3, 1.0, %v2234_v30  ;;  %vm154_vm6 = vmor %vm124_vm4, %vm148_vm5  ;;  %vm225_vm4 = vcmask 261120   ;;  %vm76_vm5 = vcmp.ge.s32.totalorder %v73_v44, 4 }
  0x81   :  { %1960 = vmatmul.msk.f32.vlgmr.msra.gmra.mxu0 %vm171_vm2, %v1954_v31  ;;  %v1955_v33 = vsel %vm154_vm6, 1.0, %v2234_v30  ;;  %226 = vst.msk [vmem:[#allocation2] sm:$0xff] %vm225_vm4, %v2234_v30  ;;  %v2313_v45 = vsel %vm76_vm5, 1.0, %v2234_v30  ;;  %vm81_vm6 = vcmp.lt.s32.totalorder %v75_v48, 20 }
  0x82   :  { %227 = vst.msk [vmem:[#allocation2 + $0x8] sm:$0xff] %vm225_vm4, %v2234_v30  ;;  %v2319_v51 = vsel %vm81_vm6, 1.0, %v2234_v30  ;;  %vm477_vm6 = vcmask 785408  }
  0x83   :  { %228 = vst.msk [vmem:[#allocation2 + $0x10] sm:$0xff] %vm225_vm4, %v2234_v30 }
  0x84   :  { %229 = vst.msk [vmem:[#allocation2 + $0x18] sm:$0xff] %vm225_vm4, %v2234_v30 }
  0x85   :  { %230 = vst.msk [vmem:[#allocation2 + $0x20] sm:$0xff] %vm225_vm4, %v2234_v30 }
  0x86   :  { %v116_v34 = vpop.permute.xlu1 %115  ;;  %v119_v38 = vpop.permute.xlu0 %118  ;;  %231 = vst.msk [vmem:[#allocation2 + $0x28] sm:$0xff] %vm225_vm4, %v2234_v30 }
  0x87   :  { %vm126_vm11 = vcmp.eq.s32.totalorder %v104_v26, %v116_v34  ;;  %vm127_vm14 = vcmp.eq.s32.totalorder %v104_v26, %v119_v38  ;;  %232 = vst.msk [vmem:[#allocation2 + $0x30] sm:$0xff] %vm225_vm4, %v2234_v30 }
  0x88   :  { %vm156_vm12 = vmor %vm126_vm11, %vm150_vm10  ;;  %vm1718_vm10 = vcmask 269568   ;;  %vm1765_vm11 = vcmask 1043456  }
  0x89   :  { %1961 = vmatmul.msk.f32.gmra.mxu0 %vm171_vm2, %v1955_v33  ;;  %v1957_v39 = vsel %vm156_vm12, 1.0, %v2234_v30 }
  0x8f   :  { %v143_v37 = vpop.permute.xlu1 %142 }
  0x90   :  { %vm151_vm13 = vcmp.eq.s32.totalorder %v104_v26, %v143_v37 }
  0x91   :  { %1962 = vmatmul.msk.f32.gmra.mxu0 %vm171_vm2, %v1956_v36  ;;  %vm157_vm15 = vmor %vm127_vm14, %vm151_vm13 }
  0x92   :  { %v1958_v40 = vsel %vm157_vm15, 1.0, %v2234_v30 }
  0x97   :  { %v146_v42 = vpop.permute.xlu1 %145 }
  0x98   :  { %vm152_vm1 = vcmp.eq.s32.totalorder %v104_v26, %v146_v42  ;;  %v2060_v42 = vld [vmem:[%s3092_s1 + $0x78] ss:$0 sm:$0xff] }
  0x99   :  { %1963 = vmatmul.msk.f32.gmra.mxu0 %vm171_vm2, %v1957_v39  ;;  %vm158_vm3 = vmor %vm128_vm0, %vm152_vm1 }
  0x9a   :  { %v1959_v43 = vsel %vm158_vm3, 1.0, %v2234_v30 }
  0xa1   :  { %1964 = vmatmul.msk.f32.gmra.mxu0 %vm171_vm2, %v1958_v40 }
  0xa9   :  { %1965 = vmatmul.msk.f32.gmra.mxu0 %vm171_vm2, %v1959_v43  ;;  %vm239_vm2 = vcmask 130048  }
  0xfe   :  { %v207_v46 = vpop.f32.mrf.mxu0 }
  0xff   :  { %v233_v47 = vmul.f32 %v2313_v45, %v207_v46 }
 0x101   :  { %240 = vst.msk [vmem:[#allocation2 + $0x4] sm:$0xff] %vm239_vm2, %v233_v47 }
 0x106   :  { %v210_v49 = vpop.f32.mrf.mxu0 }
 0x107   :  { %241 = vst.msk [vmem:[#allocation2 + $0xc] sm:$0xff] %vm239_vm2, %v210_v49 }
 0x108   :  { %v252_v50 = vld [vmem:[#allocation2 + $0x4] sm:$0xff] }
 0x109   :  { %270 = vrot.lane.b32.xlu2 %v252_v50, %s2235_s10  ;;  %v246_v13 = vld [vmem:[#allocation2 + $0x3] sm:$0xff] }
 0x10e   :  { %v258_v52 = vld [vmem:[#allocation2 + $0x5] sm:$0xff]  ;;  %v213_v53 = vpop.f32.mrf.mxu0 }
 0x10f   :  { %v253_v54 = vld [vmem:[#allocation2 + $0xc] sm:$0xff]  ;;  %v235_v55 = vmul.f32 %v2319_v51, %v213_v53  ;;  %294 = vrot.lane.b32.xlu0 %v258_v52, %s2236_s11 }
 0x110   :  { %272 = vrot.lane.b32.xlu1 %v253_v54, %s2235_s10  ;;  %v247_v18 = vld [vmem:[#allocation2 + $0xb] sm:$0xff] }
 0x111   :  { %242 = vst.msk [vmem:[#allocation2 + $0x14] sm:$0xff] %vm239_vm2, %v235_v55 }
 0x116   :  { %v216_v56 = vpop.f32.mrf.mxu0 }
 0x117   :  { %v236_v57 = vmul.f32 %v2313_v45, %v216_v56 }
 0x118   :  { %v259_v58 = vld [vmem:[#allocation2 + $0xd] sm:$0xff] }
 0x119   :  { %v254_v59 = vld [vmem:[#allocation2 + $0x14] sm:$0xff]  ;;  %243 = vst.msk [vmem:[#allocation2 + $0x1c] sm:$0xff] %vm239_vm2, %v236_v57  ;;  %296 = vrot.lane.b32.xlu2 %v259_v58, %s2236_s11 }
 0x11a   :  { %274 = vrot.lane.b32.xlu0 %v254_v59, %s2235_s10  ;;  %v248_v23 = vld [vmem:[#allocation2 + $0x13] sm:$0xff] }
 0x11e   :  { %v219_v60 = vpop.f32.mrf.mxu0 }
 0x11f   :  { %244 = vst.msk [vmem:[#allocation2 + $0x24] sm:$0xff] %vm239_vm2, %v219_v60 }
 0x120   :  { %v260_v61 = vld [vmem:[#allocation2 + $0x15] sm:$0xff] }
 0x121   :  { %v255_v62 = vld [vmem:[#allocation2 + $0x1c] sm:$0xff]  ;;  %298 = vrot.lane.b32.xlu1 %v260_v61, %s2236_s11 }
 0x122   :  { %276 = vrot.lane.b32.xlu2 %v255_v62, %s2235_s10  ;;  %v249_v29 = vld [vmem:[#allocation2 + $0x1b] sm:$0xff] }
 0x126   :  { %v261_v63 = vld [vmem:[#allocation2 + $0x1d] sm:$0xff]  ;;  %v222_v0 = vpop.f32.mrf.mxu0 }
 0x127   :  { %v256_v1 = vld [vmem:[#allocation2 + $0x24] sm:$0xff]  ;;  %v238_v2 = vmul.f32 %v2319_v51, %v222_v0  ;;  %300 = vrot.lane.b32.xlu0 %v261_v63, %s2236_s11 }
 0x128   :  { %v250_v33 = vld [vmem:[#allocation2 + $0x23] sm:$0xff] }
 0x129   :  { %245 = vst.msk [vmem:[#allocation2 + $0x2c] sm:$0xff] %vm239_vm2, %v238_v2  ;;  %278 = vrot.lane.b32.xlu1 %v256_v1, %s2235_s10 }
 0x130   :  { %v262_v3 = vld [vmem:[#allocation2 + $0x25] sm:$0xff]  ;;  %v263_v4 = vld [vmem:[#allocation2 + $0x2d] sm:$0xff] }
 0x131   :  { %304 = vrot.lane.b32.xlu1 %v263_v4, %s2236_s11  ;;  %302 = vrot.lane.b32.xlu2 %v262_v3, %s2236_s11  ;;  %v257_v5 = vld [vmem:[#allocation2 + $0x2c] sm:$0xff] }
 0x132   :  { %280 = vrot.lane.b32.xlu0 %v257_v5, %s2235_s10  ;;  %v251_v38 = vld [vmem:[#allocation2 + $0x2b] sm:$0xff]  ;;  %s1941_s10 = sshll.u32 %s2239_s9, 4  ;;  %s1942_s10 = int_to_ptr.vmem [resolvable:$true] %s1941_s10 }
 0x163   :  { %v271_v12 = vpop.permute.xlu2 %270 }
 0x164   :  { %v312_v14 = vsel %vm239_vm2, %v246_v13, %v271_v12 }
 0x173   :  { %v297_v20 = vpop.permute.xlu2 %296 }
 0x17c   :  { %v277_v27 = vpop.permute.xlu2 %276 }
 0x17d   :  { %v315_v30 = vsel %vm239_vm2, %v249_v29, %v277_v27 }
 0x181   :  { %v295_v15 = vpop.permute.xlu0 %294 }
 0x182   :  { %v318_v16 = vsel %vm225_vm4, %v312_v14, %v295_v15  ;;  %v273_v17 = vpop.permute.xlu1 %272 }
 0x183   :  { %1966 = vmatmul.msk.f32.vlgmr.msra.gmra.mxu1 %vm325_vm7, %v318_v16  ;;  %v313_v19 = vsel %vm239_vm2, %v247_v18, %v273_v17 }
 0x184   :  { %v319_v21 = vsel %vm225_vm4, %v313_v19, %v297_v20 }
 0x18b   :  { %1967 = vmatmul.msk.f32.gmra.mxu1 %vm325_vm7, %v319_v21  ;;  %v303_v35 = vpop.permute.xlu2 %302 }
 0x18c   :  { %v275_v22 = vpop.permute.xlu0 %274 }
 0x18d   :  { %v314_v24 = vsel %vm239_vm2, %v248_v23, %v275_v22 }
 0x193   :  { %v299_v25 = vpop.permute.xlu1 %298 }
 0x194   :  { %v320_v26 = vsel %vm225_vm4, %v314_v24, %v299_v25 }
 0x195   :  { %1968 = vmatmul.msk.f32.gmra.mxu1 %vm325_vm7, %v320_v26 }
 0x199   :  { %v301_v28 = vpop.permute.xlu0 %300 }
 0x19a   :  { %v321_v31 = vsel %vm225_vm4, %v315_v30, %v301_v28 }
 0x19b   :  { %v279_v32 = vpop.permute.xlu1 %278 }
 0x19c   :  { %v316_v34 = vsel %vm239_vm2, %v250_v33, %v279_v32 }
 0x19d   :  { %1969 = vmatmul.msk.f32.gmra.mxu1 %vm325_vm7, %v321_v31  ;;  %v322_v36 = vsel %vm225_vm4, %v316_v34, %v303_v35 }
 0x1a3   :  { %v305_v39 = vpop.permute.xlu1 %304 }
 0x1a4   :  { %v281_v37 = vpop.permute.xlu0 %280 }
 0x1a5   :  { %1970 = vmatmul.msk.f32.gmra.mxu1 %vm325_vm7, %v322_v36  ;;  %v317_v40 = vsel %vm239_vm2, %v251_v38, %v281_v37  ;;  %vm469_vm2 = vcmask 523264  }
 0x1a6   :  { %v323_v41 = vsel %vm225_vm4, %v317_v40, %v305_v39 }
 0x1ad   :  { %1971 = vmatmul.msk.f32.gmra.mxu1 %vm325_vm7, %v323_v41  ;;  %vm1909_vm7 = vcmask 1041409  }
 0x200   :  { %v361_v43 = vpop.f32.mrf.mxu1 }
 0x201   :  { %v362_v44 = vadd.f32 %v2060_v42, %v361_v43 }
 0x203   :  { %2065 = vtanh.f32 %v362_v44  ;;  %v1717_v55 = vsel %vm1716_vm8, %v362_v44, -inf }
 0x208   :  { %v364_v46 = vpop.f32.mrf.mxu1 }
 0x209   :  { %v2066_v47 = vpop.eup %2065  ;;  %v365_v48 = vadd.f32 %v2060_v42, %v364_v46 }
 0x20a   :  { %v385_v49 = vmul.f32 %v2066_v47, %v2313_v45 }
 0x20b   :  { %2067 = vtanh.f32 %v365_v48  ;;  %v1719_v58 = vsel %vm1718_vm10, %v365_v48, -inf }
 0x20c   :  { %391 = vst.msk [vmem:[#allocation2 + $0x4] sm:$0xff] %vm225_vm4, %v385_v49 }
 0x211   :  { %v2068_v50 = vpop.eup %2067 }
 0x212   :  { %392 = vst.msk [vmem:[#allocation2 + $0xc] sm:$0xff] %vm225_vm4, %v2068_v50  ;;  %v367_v52 = vpop.f32.mrf.mxu1 }
 0x213   :  { %v368_v53 = vadd.f32 %v2060_v42, %v367_v52  ;;  %v403_v54 = vld [vmem:[#allocation2 + $0x4] sm:$0xff] }
 0x214   :  { %421 = vrot.lane.b32.xlu2 %v403_v54, %s2236_s11 }
 0x215   :  { %2069 = vtanh.f32 %v368_v53  ;;  %v1721_v56 = vsel %vm1720_vm9, %v368_v53, -inf }
 0x216   :  { %v1722_v57 = vmax.f32 %v1717_v55, %v1721_v56 }
 0x218   :  { %v1723_v59 = vmax.f32 %v1722_v57, %v1719_v58 }
 0x219   :  { %v404_v60 = vld [vmem:[#allocation2 + $0xc] sm:$0xff] }
 0x21a   :  { %v409_v61 = vld [vmem:[#allocation2 + $0x6] sm:$0xff]  ;;  %v1724_v62 = vrot.slane %v1723_v59, 4  ;;  %v370_v63 = vpop.f32.mrf.mxu1  ;;  %423 = vrot.lane.b32.xlu1 %v404_v60, %s2236_s11 }
 0x21b   :  { %445 = vrot.lane.b32.xlu0 %v409_v61, %s2237_s26  ;;  %v2070_v0 = vpop.eup %2069  ;;  %v2387_v1 = vadd.f32 %v2060_v42, %v370_v63 }
 0x21c   :  { %v387_v2 = vmul.f32 %v2070_v0, %v2319_v51  ;;  %v1725_v3 = vmax.f32 %v1723_v59, %v1724_v62 }
 0x21d   :  { %2071 = vtanh.f32 %v2387_v1  ;;  %v1730_v23 = vsel %vm1716_vm8, %v2387_v1, -inf  ;;  %vm1934_vm8 = vcmask 123904  }
 0x21e   :  { %393 = vst.msk [vmem:[#allocation2 + $0x14] sm:$0xff] %vm225_vm4, %v387_v2  ;;  %v1726_v4 = vrot.slane %v1725_v3, 2 }
 0x220   :  { %v1727_v5 = vmax.f32 %v1725_v3, %v1726_v4 }
 0x222   :  { %v1728_v6 = vrot.slane %v1727_v5, 1  ;;  %v373_v7 = vpop.f32.mrf.mxu1 }
 0x223   :  { %v2072_v8 = vpop.eup %2071  ;;  %v2392_v9 = vadd.f32 %v2060_v42, %v373_v7 }
 0x224   :  { %v1729_v10 = vmax.f32 %v1727_v5, %v1728_v6  ;;  %v388_v11 = vmul.f32 %v2072_v8, %v2313_v45 }
 0x225   :  { %v410_v12 = vld [vmem:[#allocation2 + $0xe] sm:$0xff]  ;;  %2073 = vtanh.f32 %v2392_v9  ;;  %v1731_v28 = vsel %vm1718_vm10, %v2392_v9, -inf }
 0x226   :  { %v405_v13 = vld [vmem:[#allocation2 + $0x14] sm:$0xff]  ;;  %v1741_v14 = vsub.f32 %v362_v44, %v1729_v10  ;;  %v1742_v15 = vsub.f32 %v365_v48, %v1729_v10  ;;  %v1743_v16 = vsub.f32 %v368_v53, %v1729_v10  ;;  %394 = vst.msk [vmem:[#allocation2 + $0x1c] sm:$0xff] %vm225_vm4, %v388_v11  ;;  %447 = vrot.lane.b32.xlu2 %v410_v12, %s2237_s26 }
 0x227   :  { %425 = vrot.lane.b32.xlu0 %v405_v13, %s2236_s11 }
 0x228   :  { %v1747_v17 = vmul.f32 1.442695, %v1741_v14  ;;  %v1749_v18 = vmul.f32 1.442695, %v1742_v15  ;;  %v1751_v19 = vmul.f32 1.442695, %v1743_v16 }
 0x22a   :  { %2075 = vpow2.f32 %v1747_v17  ;;  %v376_v20 = vpop.f32.mrf.mxu1  ;;  %v2445_v17 = vld [vmem:[%s3092_s1 + $0xd8] sm:$0xff] }
 0x22b   :  { %v2074_v21 = vpop.eup %2073  ;;  %2077 = vpow2.f32 %v1749_v18  ;;  %v377_v22 = vadd.f32 %v2060_v42, %v376_v20  ;;  %v2450_v18 = vld [vmem:[%s3092_s1 + $0xd0] sm:$0xff]  ;;  %500 = vmatpush.msra.mxu2 %v2445_v17  ;;  %2027 = vmatpush.msra.mxu3 %v2445_v17 }
 0x22c   :  { %2079 = vpow2.f32 %v1751_v19  ;;  %395 = vst.msk [vmem:[#allocation2 + $0x24] sm:$0xff] %vm225_vm4, %v2074_v21  ;;  %944 = vmatpush.msrb.mxu0 %v2445_v17 }
 0x22d   :  { %2081 = vtanh.f32 %v377_v22  ;;  %v1732_v24 = vsel %vm1720_vm9, %v377_v22, -inf  ;;  %v411_v25 = vld [vmem:[#allocation2 + $0x16] sm:$0xff]  ;;  %501 = vmatpush.msra.mxu2 %v2450_v18  ;;  %2028 = vmatpush.msra.mxu3 %v2450_v18 }
 0x22e   :  { %v406_v26 = vld [vmem:[#allocation2 + $0x1c] sm:$0xff]  ;;  %v1733_v27 = vmax.f32 %v1730_v23, %v1732_v24  ;;  %449 = vrot.lane.b32.xlu1 %v411_v25, %s2237_s26  ;;  %v2457_v23 = vld [vmem:[%s3092_s1 + $0xc8] sm:$0xff]  ;;  %945 = vmatpush.msrb.mxu0 %v2450_v18 }
 0x22f   :  { %427 = vrot.lane.b32.xlu2 %v406_v26, %s2236_s11  ;;  %v2465_v26 = vld [vmem:[%s3092_s1 + $0xc0] sm:$0xff]  ;;  %502 = vmatpush.msra.mxu2 %v2457_v23 }
 0x230   :  { %v2407_v29 = vpop.eup %2075  ;;  %v1734_v30 = vmax.f32 %v1733_v27, %v1731_v28  ;;  %2029 = vmatpush.msra.mxu3 %v2457_v23  ;;  %946 = vmatpush.msrb.mxu0 %v2457_v23 }
 0x231   :  { %v2409_v31 = vpop.eup %2077  ;;  %v1766_v32 = vrot.slane %v2407_v29, 4  ;;  %503 = vmatpush.msra.mxu2 %v2465_v26 }
 0x232   :  { %v2412_v33 = vpop.eup %2079  ;;  %v1767_v34 = vrot.slane %v2409_v31, 4  ;;  %v1735_v35 = vrot.slane %v1734_v30, 4  ;;  %2030 = vmatpush.msra.mxu3 %v2465_v26  ;;  %947 = vmatpush.msrb.mxu0 %v2465_v26 }
 0x233   :  { %v2082_v36 = vpop.eup %2081  ;;  %v1769_v37 = vrot.slane %v2412_v33, 4  ;;  %v412_v38 = vld [vmem:[#allocation2 + $0x1e] sm:$0xff] }
 0x234   :  { %v1768_v39 = vsel %vm1765_vm11, %v1766_v32, %v1767_v34  ;;  %v390_v40 = vmul.f32 %v2082_v36, %v2319_v51  ;;  %v1736_v41 = vmax.f32 %v1734_v30, %v1735_v35  ;;  %451 = vrot.lane.b32.xlu0 %v412_v38, %s2237_s26  ;;  %v407_v44 = vld [vmem:[#allocation2 + $0x24] sm:$0xff]  ;;  %v2473_v32 = vld [vmem:[%s3092_s1 + $0xb8] sm:$0xff] }
 0x235   :  { %v1770_v42 = vsel %vm1765_vm11, %v1767_v34, %v1769_v37  ;;  %v1780_v43 = vsel %vm1718_vm10, %v1768_v39, 0.0  ;;  %504 = vmatpush.msra.mxu2 %v2473_v32  ;;  %2031 = vmatpush.msra.mxu3 %v2473_v32 }
 0x236   :  { %v1781_v46 = vsel %vm1718_vm10, %v1770_v42, 0.0  ;;  %396 = vst.msk [vmem:[#allocation2 + $0x2c] sm:$0xff] %vm225_vm4, %v390_v40  ;;  %v1737_v47 = vrot.slane %v1736_v41, 2  ;;  %429 = vrot.lane.b32.xlu1 %v407_v44, %s2236_s11  ;;  %948 = vmatpush.msrb.mxu0 %v2473_v32 }
 0x237   :  { %v1782_v48 = vadd.f32 %v1781_v46, %v1780_v43  ;;  %v2514_v43 = vld [vmem:[%s3092_s1 + $0x98] sm:$0xff] }
 0x238   :  { %v1738_v49 = vmax.f32 %v1736_v41, %v1737_v47 }
 0x239   :  { %v1783_v50 = vrot.slane %v1782_v48, 4 }
 0x23a   :  { %v1739_v52 = vrot.slane %v1738_v49, 1 }
 0x23b   :  { %v1784_v53 = vadd.f32 %v1783_v50, %v1782_v48  ;;  %v2526_v50 = vld [vmem:[%s3092_s1 + $0x90] sm:$0xff] }
 0x23c   :  { %v1740_v54 = vmax.f32 %v1738_v49, %v1739_v52  ;;  %v2531_v52 = vld [vmem:[%s3092_s1 + $0x88] sm:$0xff] }
 0x23d   :  { %v1785_v55 = vrot.slane %v1784_v53, 2  ;;  %v413_v56 = vld [vmem:[#allocation2 + $0x26] sm:$0xff]  ;;  %v414_v57 = vld [vmem:[#allocation2 + $0x2e] sm:$0xff] }
 0x23e   :  { %v1744_v58 = vsub.f32 %v2387_v1, %v1740_v54  ;;  %v1746_v59 = vsub.f32 %v377_v22, %v1740_v54  ;;  %455 = vrot.lane.b32.xlu1 %v414_v57, %s2237_s26  ;;  %453 = vrot.lane.b32.xlu2 %v413_v56, %s2237_s26  ;;  %v408_v60 = vld [vmem:[#allocation2 + $0x2c] sm:$0xff]  ;;  %v1745_v61 = vsub.f32 %v2392_v9, %v1740_v54  ;;  %v2541_v56 = vld [vmem:[%s3092_s1 + $0x80] sm:$0xff] }
 0x23f   :  { %431 = vrot.lane.b32.xlu0 %v408_v60, %s2236_s11  ;;  %v1786_v62 = vadd.f32 %v1785_v55, %v1784_v53 }
 0x240   :  { %v1753_v63 = vmul.f32 1.442695, %v1744_v58  ;;  %v1757_v0 = vmul.f32 1.442695, %v1746_v59  ;;  %v1755_v2 = vmul.f32 1.442695, %v1745_v61 }
 0x241   :  { %v1787_v3 = vrot.slane %v1786_v62, 1 }
 0x242   :  { %2083 = vpow2.f32 %v1753_v63 }
 0x243   :  { %2085 = vpow2.f32 %v1757_v0  ;;  %v1788_v4 = vadd.f32 %v1787_v3, %v1786_v62  ;;  %v397_v62 = vld [vmem:[#allocation2 + $0x2] sm:$0xff] }
 0x244   :  { %2087 = vpow2.f32 %v1755_v2 }
 0x245   :  { %2089 = vrcp.f32 %v1788_v4  ;;  %v1809_v19 = vand.u32 2147483648, %v1788_v4  ;;  %v1807_v22 = vand.u32 2147483647, %v1788_v4  ;;  %vm1803_vm13 = vweird.f32 %v1788_v4 }
 0x247   :  { %v1810_v27 = vor.u32 1.1754944e-38, %v1809_v19  ;;  %vm1808_vm15 = vcmp.eq.f32.partialorder %v1807_v22, 8.507059e+37 }
 0x248   :  { %v2429_v1 = vpop.eup %2083 }
 0x249   :  { %v2431_v5 = vpop.eup %2085  ;;  %v1771_v6 = vrot.slane %v2429_v1, 4 }
 0x24a   :  { %v2434_v7 = vpop.eup %2087  ;;  %v1774_v8 = vrot.slane %v2431_v5, 4 }
 0x24b   :  { %v2090_v9 = vpop.eup %2089  ;;  %v1772_v10 = vrot.slane %v2434_v7, 4 }
 0x24c   :  { %v1799_v11 = vmul.f32 %v2090_v9, %v1788_v4  ;;  %vm1804_vm12 = vweird.f32 %v2090_v9  ;;  %v398_v4 = vld [vmem:[#allocation2 + $0xa] sm:$0xff] }
 0x24d   :  { %v1773_v12 = vsel %vm1765_vm11, %v1771_v6, %v1772_v10  ;;  %v1775_v13 = vsel %vm1765_vm11, %v1772_v10, %v1774_v8  ;;  %vm1805_vm14 = vmor %vm1803_vm13, %vm1804_vm12  ;;  %v399_v8 = vld [vmem:[#allocation2 + $0x12] sm:$0xff] }
 0x24e   :  { %v1800_v14 = vsub.f32 1.0, %v1799_v11  ;;  %v1789_v15 = vsel %vm1718_vm10, %v1773_v12, 0.0  ;;  %v1790_v16 = vsel %vm1718_vm10, %v1775_v13, 0.0  ;;  %v400_v13 = vld [vmem:[#allocation2 + $0x1a] sm:$0xff] }
 0x24f   :  { %v1791_v20 = vadd.f32 %v1790_v16, %v1789_v15 }
 0x250   :  { %v1801_v21 = vmul.f32 %v2090_v9, %v1800_v14 }
 0x251   :  { %v1792_v24 = vrot.slane %v1791_v20, 4 }
 0x252   :  { %v1802_v25 = vadd.f32 %v2090_v9, %v1801_v21 }
 0x253   :  { %v1793_v28 = vadd.f32 %v1792_v24, %v1791_v20  ;;  %v401_v20 = vld [vmem:[#allocation2 + $0x22] sm:$0xff] }
 0x254   :  { %v1806_v30 = vsel %vm1805_vm14, %v2090_v9, %v1802_v25 }
 0x255   :  { %v1811_v34 = vsel %vm1808_vm15, %v1810_v27, %v1806_v30  ;;  %v1794_v35 = vrot.slane %v1793_v28, 2  ;;  %v402_v27 = vld [vmem:[#allocation2 + $0x2a] sm:$0xff] }
 0x256   :  { %v2479_v36 = vmul.f32 %v2412_v33, %v1811_v34  ;;  %v2482_v37 = vmul.f32 %v2407_v29, %v1811_v34  ;;  %v2485_v38 = vmul.f32 %v2409_v31, %v1811_v34  ;;  %v2494_v29 = vld [vmem:[%s3092_s1 + $0xb0] sm:$0xff]  ;;  %v2499_v31 = vld [vmem:[%s3092_s1 + $0xa8] sm:$0xff]  ;;  %v2506_v33 = vld [vmem:[%s3092_s1 + $0xa0] sm:$0xff] }
 0x257   :  { %v1795_v39 = vadd.f32 %v1794_v35, %v1793_v28  ;;  %505 = vmatpush.msra.mxu2 %v2494_v29  ;;  %2032 = vmatpush.msra.mxu3 %v2494_v29  ;;  %v2577_v35 = vld [vmem:[%s3092_s1 + $0xe0] ss:$0 sm:$0xff] }
 0x258   :  { %949 = vmatpush.msrb.mxu0 %v2494_v29 }
 0x259   :  { %v1796_v40 = vrot.slane %v1795_v39, 1  ;;  %506 = vmatpush.msra.mxu2 %v2499_v31  ;;  %2033 = vmatpush.msra.mxu3 %v2499_v31 }
 0x25a   :  { %950 = vmatpush.msrb.mxu0 %v2499_v31 }
 0x25b   :  { %v1797_v41 = vadd.f32 %v1796_v40, %v1795_v39  ;;  %507 = vmatpush.msra.mxu2 %v2506_v33  ;;  %2034 = vmatpush.msra.mxu3 %v2506_v33 }
 0x25c   :  { %951 = vmatpush.msrb.mxu0 %v2506_v33 }
 0x25d   :  { %2091 = vrcp.f32 %v1797_v41  ;;  %508 = vmatpush.msra.mxu2 %v2514_v43  ;;  %2035 = vmatpush.msra.mxu3 %v2514_v43  ;;  %v1826_v47 = vand.u32 2147483648, %v1797_v41  ;;  %v1824_v49 = vand.u32 2147483647, %v1797_v41  ;;  %vm1820_vm1 = vweird.f32 %v1797_v41 }
 0x25e   :  { %952 = vmatpush.msrb.mxu0 %v2514_v43 }
 0x25f   :  { %509 = vmatpush.msra.mxu2 %v2526_v50  ;;  %2036 = vmatpush.msra.mxu3 %v2526_v50  ;;  %v1827_v54 = vor.u32 1.1754944e-38, %v1826_v47  ;;  %vm1825_vm5 = vcmp.eq.f32.partialorder %v1824_v49, 8.507059e+37 }
 0x260   :  { %953 = vmatpush.msrb.mxu0 %v2526_v50 }
 0x261   :  { %510 = vmatpush.msra.mxu2 %v2531_v52  ;;  %2037 = vmatpush.msra.mxu3 %v2531_v52 }
 0x262   :  { %954 = vmatpush.msrb.mxu0 %v2531_v52 }
 0x263   :  { %v2092_v42 = vpop.eup %2091  ;;  %511 = vmatpush.msra.mxu2 %v2541_v56  ;;  %2038 = vmatpush.msra.mxu3 %v2541_v56 }
 0x264   :  { %v1816_v44 = vmul.f32 %v2092_v42, %v1797_v41  ;;  %vm1821_vm0 = vweird.f32 %v2092_v42  ;;  %955 = vmatpush.msrb.mxu0 %v2541_v56 }
 0x265   :  { %vm1822_vm3 = vmor %vm1820_vm1, %vm1821_vm0 }
 0x266   :  { %v1817_v46 = vsub.f32 1.0, %v1816_v44 }
 0x268   :  { %v1818_v48 = vmul.f32 %v2092_v42, %v1817_v46 }
 0x26a   :  { %v1819_v53 = vadd.f32 %v2092_v42, %v1818_v48 }
 0x26c   :  { %v1823_v55 = vsel %vm1822_vm3, %v2092_v42, %v1819_v53 }
 0x26d   :  { %v1828_v57 = vsel %vm1825_vm5, %v1827_v54, %v1823_v55 }
 0x26e   :  { %v2547_v58 = vmul.f32 %v2434_v7, %v1828_v57  ;;  %v2550_v59 = vmul.f32 %v2429_v1, %v1828_v57  ;;  %v2553_v60 = vmul.f32 %v2431_v5, %v1828_v57  ;;  %v422_v61 = vpop.permute.xlu2 %421 }
 0x26f   :  { %v463_v63 = vsel %vm225_vm4, %v397_v62, %v422_v61 }
 0x280   :  { %v448_v6 = vpop.permute.xlu2 %447 }
 0x289   :  { %v428_v12 = vpop.permute.xlu2 %427 }
 0x28a   :  { %v466_v14 = vsel %vm225_vm4, %v400_v13, %v428_v12 }
 0x28c   :  { %v424_v3 = vpop.permute.xlu1 %423 }
 0x28d   :  { %v446_v0 = vpop.permute.xlu0 %445  ;;  %v464_v1 = vsel %vm225_vm4, %v398_v4, %v424_v3 }
 0x28e   :  { %v470_v2 = vsel %vm469_vm2, %v463_v63, %v446_v0  ;;  %v471_v5 = vsel %vm469_vm2, %v464_v1, %v448_v6 }
 0x28f   :  { %1972 = vmatmul.msk.f32.vlgmr.msra.gmra.mxu2 %vm477_vm6, %v470_v2 }
 0x297   :  { %1973 = vmatmul.msk.f32.gmra.mxu2 %vm477_vm6, %v471_v5 }
 0x298   :  { %v454_v22 = vpop.permute.xlu2 %453 }
 0x299   :  { %v426_v7 = vpop.permute.xlu0 %425 }
 0x29a   :  { %v465_v9 = vsel %vm225_vm4, %v399_v8, %v426_v7 }
 0x2a0   :  { %v450_v10 = vpop.permute.xlu1 %449 }
 0x2a1   :  { %v472_v11 = vsel %vm469_vm2, %v465_v9, %v450_v10 }
 0x2a2   :  { %1974 = vmatmul.msk.f32.gmra.mxu2 %vm477_vm6, %v472_v11 }
 0x2a6   :  { %v452_v15 = vpop.permute.xlu0 %451 }
 0x2a7   :  { %v473_v16 = vsel %vm469_vm2, %v466_v14, %v452_v15 }
 0x2a8   :  { %1975 = vmatmul.msk.f32.vlgmr.msra.gmra.mxu3 %vm477_vm6, %v473_v16  ;;  %v430_v19 = vpop.permute.xlu1 %429 }
 0x2a9   :  { %v467_v21 = vsel %vm225_vm4, %v401_v20, %v430_v19  ;;  %v51_v20 = vld [vmem:[%s3092_s1 + $0x140] sm:$0xff] }
 0x2aa   :  { %v474_v24 = vsel %vm469_vm2, %v467_v21, %v454_v22  ;;  %v50_v21 = vld [vmem:[%s3092_s1 + $0x138] sm:$0xff]  ;;  %645 = vmatpush.msrb.mxu3 %v51_v20  ;;  %1088 = vmatpush.msrb.mxu2 %v51_v20  ;;  %v49_v22 = vld [vmem:[%s3092_s1 + $0x130] sm:$0xff] }
 0x2ab   :  { %1530 = vmatpush.msra.mxu0 %v51_v20 }
 0x2ac   :  { %646 = vmatpush.msrb.mxu3 %v50_v21  ;;  %1089 = vmatpush.msrb.mxu2 %v50_v21 }
 0x2ad   :  { %1531 = vmatpush.msra.mxu0 %v50_v21 }
 0x2ae   :  { %647 = vmatpush.msrb.mxu3 %v49_v22  ;;  %1090 = vmatpush.msrb.mxu2 %v49_v22 }
 0x2af   :  { %1532 = vmatpush.msra.mxu0 %v49_v22 }
 0x2b0   :  { %1976 = vmatmul.msk.f32.gmra.mxu3 %vm477_vm6, %v474_v24  ;;  %v456_v28 = vpop.permute.xlu1 %455  ;;  %v48_v24 = vld [vmem:[%s3092_s1 + $0x128] sm:$0xff] }
 0x2b1   :  { %v432_v25 = vpop.permute.xlu0 %431  ;;  %648 = vmatpush.msrb.mxu3 %v48_v24  ;;  %1091 = vmatpush.msrb.mxu2 %v48_v24 }
 0x2b2   :  { %v468_v30 = vsel %vm225_vm4, %v402_v27, %v432_v25  ;;  %v47_v25 = vld [vmem:[%s3092_s1 + $0x120] sm:$0xff]  ;;  %v46_v27 = vld [vmem:[%s3092_s1 + $0x118] sm:$0xff]  ;;  %1533 = vmatpush.msra.mxu0 %v48_v24 }
 0x2b3   :  { %v475_v34 = vsel %vm469_vm2, %v468_v30, %v456_v28  ;;  %649 = vmatpush.msrb.mxu3 %v47_v25  ;;  %1092 = vmatpush.msrb.mxu2 %v47_v25  ;;  %v45_v28 = vld [vmem:[%s3092_s1 + $0x110] sm:$0xff]  ;;  %v44_v30 = vld [vmem:[%s3092_s1 + $0x108] sm:$0xff] }
 0x2b4   :  { %1534 = vmatpush.msra.mxu0 %v47_v25 }
 0x2b5   :  { %650 = vmatpush.msrb.mxu3 %v46_v27  ;;  %1093 = vmatpush.msrb.mxu2 %v46_v27 }
 0x2b6   :  { %1535 = vmatpush.msra.mxu0 %v46_v27 }
 0x2b7   :  { %651 = vmatpush.msrb.mxu3 %v45_v28  ;;  %1094 = vmatpush.msrb.mxu2 %v45_v28 }
 0x2b8   :  { %1977 = vmatmul.msk.f32.gmra.mxu3 %vm477_vm6, %v475_v34  ;;  %v43_v34 = vld [vmem:[%s3092_s1 + $0x100] sm:$0xff]  ;;  %1536 = vmatpush.msra.mxu0 %v45_v28 }
 0x2b9   :  { %652 = vmatpush.msrb.mxu3 %v44_v30  ;;  %1095 = vmatpush.msrb.mxu2 %v44_v30 }
 0x2ba   :  { %1537 = vmatpush.msra.mxu0 %v44_v30 }
 0x2bb   :  { %653 = vmatpush.msrb.mxu3 %v43_v34  ;;  %1096 = vmatpush.msrb.mxu2 %v43_v34 }
 0x2bc   :  { %1538 = vmatpush.msra.mxu0 %v43_v34 }
 0x312   :  { %v513_v39 = vpop.f32.mrf.mxu2 }
 0x313   :  { %v514_v40 = vadd.f32 %v2577_v35, %v513_v39  ;;  %v42_v39 = vld [vmem:[%s3092_s1 + $0xf8] sm:$0xff] }
 0x314   :  { %654 = vmatpush.msrb.mxu3 %v42_v39  ;;  %1097 = vmatpush.msrb.mxu2 %v42_v39 }
 0x315   :  { %2093 = vtanh.f32 %v514_v40  ;;  %1539 = vmatpush.msra.mxu0 %v42_v39  ;;  %v41_v40 = vld [vmem:[%s3092_s1 + $0xf0] sm:$0xff] }
 0x316   :  { %655 = vmatpush.msrb.mxu3 %v41_v40  ;;  %1098 = vmatpush.msrb.mxu2 %v41_v40 }
 0x317   :  { %1540 = vmatpush.msra.mxu0 %v41_v40 }
 0x31a   :  { %v516_v41 = vpop.f32.mrf.mxu2 }
 0x31b   :  { %v2094_v42 = vpop.eup %2093  ;;  %v517_v44 = vadd.f32 %v2577_v35, %v516_v41  ;;  %v40_v41 = vld [vmem:[%s3092_s1 + $0xe8] sm:$0xff] }
 0x31c   :  { %v537_v46 = vmul.f32 %v2094_v42, %v2313_v45  ;;  %656 = vmatpush.msrb.mxu3 %v40_v41  ;;  %1099 = vmatpush.msrb.mxu2 %v40_v41 }
 0x31d   :  { %2095 = vtanh.f32 %v517_v44  ;;  %1541 = vmatpush.msra.mxu0 %v40_v41  ;;  %v65_v41 = vld [vmem:[%s3092_s1 + $0x1a8] sm:$0xff] }
 0x31e   :  { %543 = vst.msk [vmem:[#allocation2 + $0x4] sm:$0xff] %vm225_vm4, %v537_v46  ;;  %795 = vmatpush.msrb.mxu1 %v65_v41  ;;  %1237 = vmatpush.msra.mxu3 %v65_v41 }
 0x31f   :  { %1679 = vmatpush.msra.mxu2 %v65_v41 }
 0x323   :  { %v2096_v47 = vpop.eup %2095 }
 0x324   :  { %544 = vst.msk [vmem:[#allocation2 + $0xc] sm:$0xff] %vm225_vm4, %v2096_v47 }
 0x325   :  { %v555_v48 = vld [vmem:[#allocation2 + $0x4] sm:$0xff]  ;;  %v519_v49 = vpop.f32.mrf.mxu2 }
 0x326   :  { %568 = vrot.lane.b32.xlu2 %v555_v48, %s2236_s11  ;;  %v520_v53 = vadd.f32 %v2577_v35, %v519_v49  ;;  %v549_v44 = vld [vmem:[#allocation2] sm:$0xff] }
 0x328   :  { %2097 = vtanh.f32 %v520_v53 }
 0x32b   :  { %v556_v54 = vld [vmem:[#allocation2 + $0xc] sm:$0xff]  ;;  %v522_v57 = vpop.f32.mrf.mxu3 }
 0x32c   :  { %v2586_v55 = vld [vmem:[#allocation2 + $0x8] sm:$0xff]  ;;  %570 = vrot.lane.b32.xlu1 %v556_v54, %s2236_s11  ;;  %v523_v61 = vadd.f32 %v2577_v35, %v522_v57 }
 0x32d   :  { %592 = vrot.lane.b32.xlu0 %v2586_v55, %s2237_s26 }
 0x32e   :  { %v2098_v62 = vpop.eup %2097  ;;  %2099 = vtanh.f32 %v523_v61 }
 0x32f   :  { %v539_v63 = vmul.f32 %v2098_v62, %v2319_v51 }
 0x331   :  { %545 = vst.msk [vmem:[#allocation2 + $0x14] sm:$0xff] %vm225_vm4, %v539_v63 }
 0x333   :  { %v525_v0 = vpop.f32.mrf.mxu3 }
 0x334   :  { %v2100_v2 = vpop.eup %2099  ;;  %v526_v3 = vadd.f32 %v2577_v35, %v525_v0 }
 0x335   :  { %v540_v4 = vmul.f32 %v2100_v2, %v2313_v45 }
 0x336   :  { %2101 = vtanh.f32 %v526_v3 }
 0x337   :  { %546 = vst.msk [vmem:[#allocation2 + $0x1c] sm:$0xff] %vm225_vm4, %v540_v4 }
 0x338   :  { %v2597_v1 = vld [vmem:[#allocation2 + $0x10] sm:$0xff] }
 0x339   :  { %v557_v6 = vld [vmem:[#allocation2 + $0x14] sm:$0xff]  ;;  %594 = vrot.lane.b32.xlu2 %v2597_v1, %s2237_s26 }
 0x33a   :  { %572 = vrot.lane.b32.xlu0 %v557_v6, %s2236_s11 }
 0x33b   :  { %v528_v5 = vpop.f32.mrf.mxu3 }
 0x33c   :  { %v2102_v7 = vpop.eup %2101  ;;  %v529_v8 = vadd.f32 %v2577_v35, %v528_v5 }
 0x33d   :  { %547 = vst.msk [vmem:[#allocation2 + $0x24] sm:$0xff] %vm225_vm4, %v2102_v7 }
 0x33e   :  { %2103 = vtanh.f32 %v529_v8  ;;  %v2604_v9 = vld [vmem:[#allocation2 + $0x18] sm:$0xff] }
 0x33f   :  { %596 = vrot.lane.b32.xlu1 %v2604_v9, %s2237_s26  ;;  %v558_v10 = vld [vmem:[#allocation2 + $0x1c] sm:$0xff] }
 0x341   :  { %574 = vrot.lane.b32.xlu2 %v558_v10, %s2236_s11 }
 0x344   :  { %v2104_v11 = vpop.eup %2103  ;;  %v2609_v12 = vld [vmem:[#allocation2 + $0x20] sm:$0xff] }
 0x345   :  { %v542_v13 = vmul.f32 %v2104_v11, %v2319_v51  ;;  %598 = vrot.lane.b32.xlu0 %v2609_v12, %s2237_s26  ;;  %v559_v14 = vld [vmem:[#allocation2 + $0x24] sm:$0xff] }
 0x347   :  { %548 = vst.msk [vmem:[#allocation2 + $0x2c] sm:$0xff] %vm225_vm4, %v542_v13  ;;  %576 = vrot.lane.b32.xlu1 %v559_v14, %s2236_s11  ;;  %v2684_v13 = vld [vmem:[%s3092_s1 + $0x148] ss:$0 sm:$0xff] }
 0x34e   :  { %v561_v15 = vld [vmem:[#allocation2 + $0x30] sm:$0xff]  ;;  %v2616_v19 = vld [vmem:[#allocation2 + $0x28] sm:$0xff] }
 0x34f   :  { %v560_v16 = vld [vmem:[#allocation2 + $0x2c] sm:$0xff]  ;;  %602 = vrot.lane.b32.xlu1 %v561_v15, %s2237_s26  ;;  %600 = vrot.lane.b32.xlu2 %v2616_v19, %s2237_s26 }
 0x350   :  { %578 = vrot.lane.b32.xlu0 %v560_v16, %s2236_s11 }
 0x380   :  { %v569_v42 = vpop.permute.xlu2 %568 }
 0x381   :  { %v610_v46 = vsel %vm225_vm4, %v549_v44, %v569_v42  ;;  %v64_v42 = vld [vmem:[%s3092_s1 + $0x1a0] sm:$0xff]  ;;  %v63_v44 = vld [vmem:[%s3092_s1 + $0x198] sm:$0xff] }
 0x382   :  { %796 = vmatpush.msrb.mxu1 %v64_v42  ;;  %1238 = vmatpush.msra.mxu3 %v64_v42 }
 0x383   :  { %1680 = vmatpush.msra.mxu2 %v64_v42 }
 0x384   :  { %797 = vmatpush.msrb.mxu1 %v63_v44  ;;  %1239 = vmatpush.msra.mxu3 %v63_v44 }
 0x385   :  { %1681 = vmatpush.msra.mxu2 %v63_v44 }
 0x393   :  { %v595_v54 = vpop.permute.xlu2 %594 }
 0x39b   :  { %v575_v2 = vpop.permute.xlu2 %574 }
 0x39c   :  { %v613_v4 = vsel %vm225_vm4, %v2604_v9, %v575_v2 }
 0x39e   :  { %v571_v49 = vpop.permute.xlu1 %570 }
 0x39f   :  { %v593_v47 = vpop.permute.xlu0 %592  ;;  %v611_v53 = vsel %vm225_vm4, %v2586_v55, %v571_v49 }
 0x3a0   :  { %v616_v48 = vsel %vm469_vm2, %v610_v46, %v593_v47  ;;  %v617_v57 = vsel %vm469_vm2, %v611_v53, %v595_v54 }
 0x3a1   :  { %1978 = vmatmul.msk.f32.vlgmr.msrb.gmra.mxu3 %vm477_vm6, %v616_v48 }
 0x3a9   :  { %1979 = vmatmul.msk.f32.gmra.mxu3 %vm477_vm6, %v617_v57  ;;  %v601_v7 = vpop.permute.xlu2 %600 }
 0x3ac   :  { %v573_v61 = vpop.permute.xlu0 %572 }
 0x3ad   :  { %v612_v62 = vsel %vm225_vm4, %v2597_v1, %v573_v61 }
 0x3b1   :  { %v597_v63 = vpop.permute.xlu1 %596 }
 0x3b2   :  { %v618_v0 = vsel %vm469_vm2, %v612_v62, %v597_v63 }
 0x3b3   :  { %1980 = vmatmul.msk.f32.gmra.mxu3 %vm477_vm6, %v618_v0 }
 0x3b7   :  { %v599_v3 = vpop.permute.xlu0 %598 }
 0x3b8   :  { %v619_v55 = vsel %vm469_vm2, %v613_v4, %v599_v3 }
 0x3b9   :  { %v577_v6 = vpop.permute.xlu1 %576 }
 0x3ba   :  { %v614_v5 = vsel %vm225_vm4, %v2609_v12, %v577_v6 }
 0x3bb   :  { %1981 = vmatmul.msk.f32.gmra.mxu3 %vm477_vm6, %v619_v55  ;;  %v620_v1 = vsel %vm469_vm2, %v614_v5, %v601_v7 }
 0x3c1   :  { %v603_v10 = vpop.permute.xlu1 %602 }
 0x3c2   :  { %v579_v8 = vpop.permute.xlu0 %578 }
 0x3c3   :  { %1982 = vmatmul.msk.f32.gmra.mxu3 %vm477_vm6, %v620_v1  ;;  %v615_v11 = vsel %vm225_vm4, %v2616_v19, %v579_v8  ;;  %v62_v1 = vld [vmem:[%s3092_s1 + $0x190] sm:$0xff]  ;;  %v61_v8 = vld [vmem:[%s3092_s1 + $0x188] sm:$0xff] }
 0x3c4   :  { %v621_v9 = vsel %vm469_vm2, %v615_v11, %v603_v10  ;;  %798 = vmatpush.msrb.mxu1 %v62_v1  ;;  %1240 = vmatpush.msra.mxu3 %v62_v1  ;;  %v60_v10 = vld [vmem:[%s3092_s1 + $0x180] sm:$0xff]  ;;  %v59_v11 = vld [vmem:[%s3092_s1 + $0x178] sm:$0xff] }
 0x3c5   :  { %1682 = vmatpush.msra.mxu2 %v62_v1 }
 0x3c6   :  { %799 = vmatpush.msrb.mxu1 %v61_v8  ;;  %1241 = vmatpush.msra.mxu3 %v61_v8 }
 0x3c7   :  { %1683 = vmatpush.msra.mxu2 %v61_v8 }
 0x3c8   :  { %800 = vmatpush.msrb.mxu1 %v60_v10  ;;  %1242 = vmatpush.msra.mxu3 %v60_v10 }
 0x3c9   :  { %1684 = vmatpush.msra.mxu2 %v60_v10 }
 0x3ca   :  { %801 = vmatpush.msrb.mxu1 %v59_v11  ;;  %1243 = vmatpush.msra.mxu3 %v59_v11 }
 0x3cb   :  { %1983 = vmatmul.msk.f32.gmra.mxu3 %vm477_vm6, %v621_v9  ;;  %v58_v9 = vld [vmem:[%s3092_s1 + $0x170] sm:$0xff]  ;;  %1685 = vmatpush.msra.mxu2 %v59_v11 }
 0x3cc   :  { %802 = vmatpush.msrb.mxu1 %v58_v9  ;;  %1244 = vmatpush.msra.mxu3 %v58_v9 }
 0x3cd   :  { %1686 = vmatpush.msra.mxu2 %v58_v9 }
 0x424   :  { %v658_v12 = vpop.f32.mrf.mxu3 }
 0x425   :  { %v659_v14 = vadd.f32 %v2684_v13, %v658_v12  ;;  %v57_v12 = vld [vmem:[%s3092_s1 + $0x168] sm:$0xff] }
 0x426   :  { %803 = vmatpush.msrb.mxu1 %v57_v12  ;;  %1245 = vmatpush.msra.mxu3 %v57_v12 }
 0x427   :  { %2105 = vtanh.f32 %v659_v14  ;;  %v56_v14 = vld [vmem:[%s3092_s1 + $0x160] sm:$0xff]  ;;  %1687 = vmatpush.msra.mxu2 %v57_v12 }
 0x428   :  { %804 = vmatpush.msrb.mxu1 %v56_v14  ;;  %1246 = vmatpush.msra.mxu3 %v56_v14 }
 0x429   :  { %1688 = vmatpush.msra.mxu2 %v56_v14 }
 0x42c   :  { %v661_v15 = vpop.f32.mrf.mxu3 }
 0x42d   :  { %v2106_v16 = vpop.eup %2105  ;;  %v662_v20 = vadd.f32 %v2684_v13, %v661_v15  ;;  %v55_v15 = vld [vmem:[%s3092_s1 + $0x158] sm:$0xff] }
 0x42e   :  { %v682_v21 = vmul.f32 %v2106_v16, %v2313_v45  ;;  %805 = vmatpush.msrb.mxu1 %v55_v15  ;;  %1247 = vmatpush.msra.mxu3 %v55_v15  ;;  %v54_v16 = vld [vmem:[%s3092_s1 + $0x150] sm:$0xff] }
 0x42f   :  { %2107 = vtanh.f32 %v662_v20  ;;  %1689 = vmatpush.msra.mxu2 %v55_v15 }
 0x430   :  { %688 = vst.msk [vmem:[#allocation2 + $0x4] sm:$0xff] %vm225_vm4, %v682_v21  ;;  %806 = vmatpush.msrb.mxu1 %v54_v16  ;;  %1248 = vmatpush.msra.mxu3 %v54_v16 }
 0x431   :  { %1690 = vmatpush.msra.mxu2 %v54_v16 }
 0x432   :  { %1386 = vmatpush.msra.mxu1 %v2445_v17 }
 0x434   :  { %1387 = vmatpush.msra.mxu1 %v2450_v18 }
 0x435   :  { %v2108_v19 = vpop.eup %2107 }
 0x436   :  { %689 = vst.msk [vmem:[#allocation2 + $0xc] sm:$0xff] %vm225_vm4, %v2108_v19  ;;  %v664_v24 = vpop.f32.mrf.mxu3  ;;  %1388 = vmatpush.msra.mxu1 %v2457_v23 }
 0x437   :  { %v700_v22 = vld [vmem:[#allocation2 + $0x4] sm:$0xff]  ;;  %v665_v25 = vadd.f32 %v2684_v13, %v664_v24 }
 0x438   :  { %718 = vrot.lane.b32.xlu2 %v700_v22, %s2236_s11  ;;  %1389 = vmatpush.msra.mxu1 %v2465_v26  ;;  %v694_v18 = vld [vmem:[#allocation2 + $0x3] sm:$0xff] }
 0x439   :  { %2109 = vtanh.f32 %v665_v25 }
 0x43a   :  { %1390 = vmatpush.msra.mxu1 %v2473_v32 }
 0x43c   :  { %1391 = vmatpush.msra.mxu1 %v2494_v29 }
 0x43d   :  { %v701_v27 = vld [vmem:[#allocation2 + $0xc] sm:$0xff] }
 0x43e   :  { %v706_v28 = vld [vmem:[#allocation2 + $0x5] sm:$0xff]  ;;  %720 = vrot.lane.b32.xlu1 %v701_v27, %s2236_s11  ;;  %v667_v30 = vpop.f32.mrf.mxu3  ;;  %1392 = vmatpush.msra.mxu1 %v2499_v31 }
 0x43f   :  { %742 = vrot.lane.b32.xlu0 %v706_v28, %s2237_s26  ;;  %v2110_v34 = vpop.eup %2109  ;;  %v668_v39 = vadd.f32 %v2684_v13, %v667_v30  ;;  %v695_v31 = vld [vmem:[#allocation2 + $0xb] sm:$0xff] }
 0x440   :  { %v684_v40 = vmul.f32 %v2110_v34, %v2319_v51  ;;  %1393 = vmatpush.msra.mxu1 %v2506_v33 }
 0x441   :  { %2111 = vtanh.f32 %v668_v39 }
 0x442   :  { %690 = vst.msk [vmem:[#allocation2 + $0x14] sm:$0xff] %vm225_vm4, %v684_v40  ;;  %1394 = vmatpush.msra.mxu1 %v2514_v43 }
 0x444   :  { %1395 = vmatpush.msra.mxu1 %v2526_v50 }
 0x446   :  { %v670_v46 = vpop.f32.mrf.mxu3  ;;  %1396 = vmatpush.msra.mxu1 %v2531_v52 }
 0x447   :  { %v2112_v47 = vpop.eup %2111  ;;  %v671_v48 = vadd.f32 %v2684_v13, %v670_v46 }
 0x448   :  { %v685_v49 = vmul.f32 %v2112_v47, %v2313_v45  ;;  %1397 = vmatpush.msra.mxu1 %v2541_v56 }
 0x449   :  { %2113 = vtanh.f32 %v671_v48  ;;  %v702_v53 = vld [vmem:[#allocation2 + $0x14] sm:$0xff] }
 0x44a   :  { %v707_v54 = vld [vmem:[#allocation2 + $0xd] sm:$0xff]  ;;  %691 = vst.msk [vmem:[#allocation2 + $0x1c] sm:$0xff] %vm225_vm4, %v685_v49  ;;  %722 = vrot.lane.b32.xlu0 %v702_v53, %s2236_s11 }
 0x44b   :  { %744 = vrot.lane.b32.xlu2 %v707_v54, %s2237_s26  ;;  %v696_v56 = vld [vmem:[#allocation2 + $0x13] sm:$0xff]  ;;  %v2783_v49 = vld [vmem:[%s3092_s1 + $0x1b0] ss:$0 sm:$0xff] }
 0x44e   :  { %v673_v57 = vpop.f32.mrf.mxu3 }
 0x44f   :  { %v2114_v61 = vpop.eup %2113  ;;  %v674_v62 = vadd.f32 %v2684_v13, %v673_v57 }
 0x450   :  { %692 = vst.msk [vmem:[#allocation2 + $0x24] sm:$0xff] %vm225_vm4, %v2114_v61 }
 0x451   :  { %2115 = vtanh.f32 %v674_v62  ;;  %v708_v63 = vld [vmem:[#allocation2 + $0x15] sm:$0xff] }
 0x452   :  { %v703_v0 = vld [vmem:[#allocation2 + $0x1c] sm:$0xff]  ;;  %746 = vrot.lane.b32.xlu1 %v708_v63, %s2237_s26 }
 0x453   :  { %724 = vrot.lane.b32.xlu2 %v703_v0, %s2236_s11  ;;  %v697_v25 = vld [vmem:[#allocation2 + $0x1b] sm:$0xff] }
 0x457   :  { %v2116_v2 = vpop.eup %2115  ;;  %v709_v3 = vld [vmem:[#allocation2 + $0x1d] sm:$0xff] }
 0x458   :  { %v687_v4 = vmul.f32 %v2116_v2, %v2319_v51  ;;  %748 = vrot.lane.b32.xlu0 %v709_v3, %s2237_s26  ;;  %v704_v55 = vld [vmem:[#allocation2 + $0x24] sm:$0xff] }
 0x459   :  { %v698_v34 = vld [vmem:[#allocation2 + $0x23] sm:$0xff] }
 0x45a   :  { %693 = vst.msk [vmem:[#allocation2 + $0x2c] sm:$0xff] %vm225_vm4, %v687_v4  ;;  %726 = vrot.lane.b32.xlu1 %v704_v55, %s2236_s11 }
 0x461   :  { %v711_v6 = vld [vmem:[#allocation2 + $0x2d] sm:$0xff]  ;;  %v710_v5 = vld [vmem:[#allocation2 + $0x25] sm:$0xff] }
 0x462   :  { %v705_v7 = vld [vmem:[#allocation2 + $0x2c] sm:$0xff]  ;;  %752 = vrot.lane.b32.xlu1 %v711_v6, %s2237_s26  ;;  %750 = vrot.lane.b32.xlu2 %v710_v5, %s2237_s26 }
 0x463   :  { %728 = vrot.lane.b32.xlu0 %v705_v7, %s2236_s11  ;;  %v699_v44 = vld [vmem:[#allocation2 + $0x2b] sm:$0xff] }
 0x492   :  { %v719_v17 = vpop.permute.xlu2 %718 }
 0x493   :  { %v760_v23 = vsel %vm225_vm4, %v694_v18, %v719_v17 }
 0x4a5   :  { %v745_v43 = vpop.permute.xlu2 %744 }
 0x4ad   :  { %v725_v22 = vpop.permute.xlu2 %724 }
 0x4ae   :  { %v763_v27 = vsel %vm225_vm4, %v697_v25, %v725_v22 }
 0x4b0   :  { %v721_v29 = vpop.permute.xlu1 %720 }
 0x4b1   :  { %v743_v26 = vpop.permute.xlu0 %742  ;;  %v761_v33 = vsel %vm225_vm4, %v695_v31, %v721_v29 }
 0x4b2   :  { %v766_v32 = vsel %vm469_vm2, %v760_v23, %v743_v26  ;;  %v767_v50 = vsel %vm469_vm2, %v761_v33, %v745_v43 }
 0x4b3   :  { %1984 = vmatmul.msk.f32.vlgmr.msrb.gmra.mxu1 %vm477_vm6, %v766_v32 }
 0x4bb   :  { %1985 = vmatmul.msk.f32.gmra.mxu1 %vm477_vm6, %v767_v50 }
 0x4bc   :  { %v723_v52 = vpop.permute.xlu0 %722  ;;  %v751_v40 = vpop.permute.xlu2 %750 }
 0x4bd   :  { %v762_v20 = vsel %vm225_vm4, %v696_v56, %v723_v52 }
 0x4c4   :  { %v747_v21 = vpop.permute.xlu1 %746 }
 0x4c5   :  { %v768_v19 = vsel %vm469_vm2, %v762_v20, %v747_v21 }
 0x4c6   :  { %1986 = vmatmul.msk.f32.gmra.mxu1 %vm477_vm6, %v768_v19 }
 0x4ca   :  { %v749_v24 = vpop.permute.xlu0 %748 }
 0x4cb   :  { %v769_v28 = vsel %vm469_vm2, %v763_v27, %v749_v24 }
 0x4cc   :  { %v727_v30 = vpop.permute.xlu1 %726 }
 0x4cd   :  { %v764_v39 = vsel %vm225_vm4, %v698_v34, %v727_v30 }
 0x4ce   :  { %1987 = vmatmul.msk.f32.gmra.mxu1 %vm477_vm6, %v769_v28  ;;  %v770_v41 = vsel %vm469_vm2, %v764_v39, %v751_v40 }
 0x4d4   :  { %v753_v46 = vpop.permute.xlu1 %752 }
 0x4d5   :  { %v729_v42 = vpop.permute.xlu0 %728 }
 0x4d6   :  { %1988 = vmatmul.msk.f32.gmra.mxu1 %vm477_vm6, %v770_v41  ;;  %v765_v47 = vsel %vm225_vm4, %v699_v44, %v729_v42 }
 0x4d7   :  { %v771_v48 = vsel %vm469_vm2, %v765_v47, %v753_v46 }
 0x4de   :  { %1989 = vmatmul.msk.f32.gmra.mxu1 %vm477_vm6, %v771_v48 }
 0x530   :  { %v808_v53 = vpop.f32.mrf.mxu1 }
 0x531   :  { %v809_v54 = vadd.f32 %v2783_v49, %v808_v53 }
 0x533   :  { %2117 = vtanh.f32 %v809_v54 }
 0x538   :  { %v811_v57 = vpop.f32.mrf.mxu1 }
 0x539   :  { %v2118_v61 = vpop.eup %2117  ;;  %v812_v62 = vadd.f32 %v2783_v49, %v811_v57 }
 0x53a   :  { %v832_v63 = vmul.f32 %v2118_v61, %v2313_v45 }
 0x53b   :  { %2119 = vtanh.f32 %v812_v62 }
 0x53c   :  { %838 = vst.msk [vmem:[#allocation2 + $0x4] sm:$0xff] %vm225_vm4, %v832_v63 }
 0x541   :  { %v2120_v0 = vpop.eup %2119 }
 0x542   :  { %839 = vst.msk [vmem:[#allocation2 + $0xc] sm:$0xff] %vm225_vm4, %v2120_v0 }
 0x543   :  { %v850_v2 = vld [vmem:[#allocation2 + $0x4] sm:$0xff]  ;;  %v814_v3 = vpop.f32.mrf.mxu1 }
 0x544   :  { %868 = vrot.lane.b32.xlu2 %v850_v2, %s2236_s11  ;;  %v815_v4 = vadd.f32 %v2783_v49, %v814_v3  ;;  %v844_v20 = vld [vmem:[#allocation2 + $0x2] sm:$0xff] }
 0x546   :  { %2121 = vtanh.f32 %v815_v4 }
 0x549   :  { %v851_v55 = vld [vmem:[#allocation2 + $0xc] sm:$0xff] }
 0x54a   :  { %v856_v6 = vld [vmem:[#allocation2 + $0x6] sm:$0xff]  ;;  %870 = vrot.lane.b32.xlu1 %v851_v55, %s2236_s11 }
 0x54b   :  { %892 = vrot.lane.b32.xlu0 %v856_v6, %s2237_s26  ;;  %v817_v5 = vpop.f32.mrf.mxu1  ;;  %v845_v25 = vld [vmem:[#allocation2 + $0xa] sm:$0xff] }
 0x54c   :  { %v2122_v7 = vpop.eup %2121  ;;  %v818_v1 = vadd.f32 %v2783_v49, %v817_v5 }
 0x54d   :  { %v834_v8 = vmul.f32 %v2122_v7, %v2319_v51 }
 0x54e   :  { %2123 = vtanh.f32 %v818_v1 }
 0x54f   :  { %840 = vst.msk [vmem:[#allocation2 + $0x14] sm:$0xff] %vm225_vm4, %v834_v8 }
 0x553   :  { %v820_v10 = vpop.f32.mrf.mxu1 }
 0x554   :  { %v2124_v11 = vpop.eup %2123  ;;  %v821_v9 = vadd.f32 %v2783_v49, %v820_v10 }
 0x555   :  { %v835_v12 = vmul.f32 %v2124_v11, %v2313_v45 }
 0x556   :  { %2125 = vtanh.f32 %v821_v9  ;;  %v857_v14 = vld [vmem:[#allocation2 + $0xe] sm:$0xff] }
 0x557   :  { %v852_v15 = vld [vmem:[#allocation2 + $0x14] sm:$0xff]  ;;  %841 = vst.msk [vmem:[#allocation2 + $0x1c] sm:$0xff] %vm225_vm4, %v835_v12  ;;  %894 = vrot.lane.b32.xlu2 %v857_v14, %s2237_s26 }
 0x558   :  { %872 = vrot.lane.b32.xlu0 %v852_v15, %s2236_s11  ;;  %v846_v39 = vld [vmem:[#allocation2 + $0x12] sm:$0xff] }
 0x55b   :  { %v823_v16 = vpop.f32.mrf.mxu1 }
 0x55c   :  { %v2126_v17 = vpop.eup %2125  ;;  %v824_v18 = vadd.f32 %v2783_v49, %v823_v16 }
 0x55d   :  { %842 = vst.msk [vmem:[#allocation2 + $0x24] sm:$0xff] %vm225_vm4, %v2126_v17 }
 0x55e   :  { %2127 = vtanh.f32 %v824_v18  ;;  %v858_v23 = vld [vmem:[#allocation2 + $0x16] sm:$0xff] }
 0x55f   :  { %v853_v26 = vld [vmem:[#allocation2 + $0x1c] sm:$0xff]  ;;  %896 = vrot.lane.b32.xlu1 %v858_v23, %s2237_s26 }
 0x560   :  { %874 = vrot.lane.b32.xlu2 %v853_v26, %s2236_s11  ;;  %v847_v47 = vld [vmem:[#allocation2 + $0x1a] sm:$0xff] }
 0x564   :  { %v2128_v32 = vpop.eup %2127  ;;  %v859_v29 = vld [vmem:[#allocation2 + $0x1e] sm:$0xff] }
 0x565   :  { %v837_v31 = vmul.f32 %v2128_v32, %v2319_v51  ;;  %898 = vrot.lane.b32.xlu0 %v859_v29, %s2237_s26  ;;  %v854_v33 = vld [vmem:[#allocation2 + $0x24] sm:$0xff] }
 0x566   :  { %v848_v57 = vld [vmem:[#allocation2 + $0x22] sm:$0xff] }
 0x567   :  { %843 = vst.msk [vmem:[#allocation2 + $0x2c] sm:$0xff] %vm225_vm4, %v837_v31  ;;  %876 = vrot.lane.b32.xlu1 %v854_v33, %s2236_s11 }
 0x56e   :  { %v861_v43 = vld [vmem:[#allocation2 + $0x2e] sm:$0xff]  ;;  %v860_v50 = vld [vmem:[#allocation2 + $0x26] sm:$0xff] }
 0x56f   :  { %v855_v52 = vld [vmem:[#allocation2 + $0x2c] sm:$0xff]  ;;  %902 = vrot.lane.b32.xlu1 %v861_v43, %s2237_s26  ;;  %900 = vrot.lane.b32.xlu2 %v860_v50, %s2237_s26 }
 0x570   :  { %878 = vrot.lane.b32.xlu0 %v855_v52, %s2236_s11  ;;  %v849_v2 = vld [vmem:[#allocation2 + $0x2a] sm:$0xff] }
 0x59e   :  { %v869_v56 = vpop.permute.xlu2 %868 }
 0x59f   :  { %v910_v21 = vsel %vm225_vm4, %v844_v20, %v869_v56 }
 0x5b1   :  { %v895_v28 = vpop.permute.xlu2 %894 }
 0x5ba   :  { %v875_v44 = vpop.permute.xlu2 %874 }
 0x5bb   :  { %v913_v48 = vsel %vm225_vm4, %v847_v47, %v875_v44 }
 0x5bc   :  { %v871_v24 = vpop.permute.xlu1 %870 }
 0x5bd   :  { %v893_v19 = vpop.permute.xlu0 %892  ;;  %v911_v27 = vsel %vm225_vm4, %v845_v25, %v871_v24 }
 0x5be   :  { %v916_v22 = vsel %vm469_vm2, %v910_v21, %v893_v19  ;;  %v917_v30 = vsel %vm469_vm2, %v911_v27, %v895_v28 }
 0x5bf   :  { %1990 = vmatmul.msk.f32.vlgmr.msrb.gmra.mxu0 %vm477_vm6, %v916_v22 }
 0x5c7   :  { %1991 = vmatmul.msk.f32.gmra.mxu0 %vm477_vm6, %v917_v30 }
 0x5c9   :  { %v901_v62 = vpop.permute.xlu2 %900 }
 0x5ca   :  { %v873_v34 = vpop.permute.xlu0 %872 }
 0x5cb   :  { %v912_v40 = vsel %vm225_vm4, %v846_v39, %v873_v34 }
 0x5d1   :  { %v897_v41 = vpop.permute.xlu1 %896 }
 0x5d2   :  { %v918_v42 = vsel %vm469_vm2, %v912_v40, %v897_v41 }
 0x5d3   :  { %1992 = vmatmul.msk.f32.gmra.mxu0 %vm477_vm6, %v918_v42 }
 0x5d7   :  { %v899_v46 = vpop.permute.xlu0 %898 }
 0x5d8   :  { %v919_v53 = vsel %vm469_vm2, %v913_v48, %v899_v46 }
 0x5d9   :  { %v877_v54 = vpop.permute.xlu1 %876 }
 0x5da   :  { %v914_v61 = vsel %vm225_vm4, %v848_v57, %v877_v54 }
 0x5db   :  { %1993 = vmatmul.msk.f32.gmra.mxu0 %vm477_vm6, %v919_v53  ;;  %v920_v63 = vsel %vm469_vm2, %v914_v61, %v901_v62 }
 0x5e1   :  { %v903_v3 = vpop.permute.xlu1 %902 }
 0x5e2   :  { %v879_v0 = vpop.permute.xlu0 %878 }
 0x5e3   :  { %1994 = vmatmul.msk.f32.gmra.mxu0 %vm477_vm6, %v920_v63  ;;  %v915_v4 = vsel %vm225_vm4, %v849_v2, %v879_v0 }
 0x5e4   :  { %v921_v55 = vsel %vm469_vm2, %v915_v4, %v903_v3 }
 0x5eb   :  { %1995 = vmatmul.msk.f32.gmra.mxu0 %vm477_vm6, %v921_v55 }
 0x63c   :  { %v957_v6 = vpop.f32.mrf.mxu0 }
 0x63d   :  { %v958_v5 = vadd.f32 %v2577_v35, %v957_v6 }
 0x63f   :  { %2129 = vtanh.f32 %v958_v5 }
 0x644   :  { %v960_v7 = vpop.f32.mrf.mxu0 }
 0x645   :  { %v2130_v1 = vpop.eup %2129  ;;  %v961_v8 = vadd.f32 %v2577_v35, %v960_v7 }
 0x646   :  { %v981_v10 = vmul.f32 %v2130_v1, %v2313_v45 }
 0x647   :  { %2131 = vtanh.f32 %v961_v8 }
 0x648   :  { %987 = vst.msk [vmem:[#allocation2 + $0x4] sm:$0xff] %vm225_vm4, %v981_v10 }
 0x64d   :  { %v2132_v11 = vpop.eup %2131 }
 0x64e   :  { %988 = vst.msk [vmem:[#allocation2 + $0xc] sm:$0xff] %vm225_vm4, %v2132_v11 }
 0x64f   :  { %v999_v9 = vld [vmem:[#allocation2 + $0x4] sm:$0xff] }
 0x650   :  { %1012 = vrot.lane.b32.xlu2 %v999_v9, %s2236_s11  ;;  %v963_v12 = vpop.f32.mrf.mxu0  ;;  %v993_v39 = vld [vmem:[#allocation2] sm:$0xff] }
 0x651   :  { %v964_v14 = vadd.f32 %v2577_v35, %v963_v12 }
 0x653   :  { %2133 = vtanh.f32 %v964_v14 }
 0x655   :  { %v1000_v15 = vld [vmem:[#allocation2 + $0xc] sm:$0xff] }
 0x656   :  { %v994_v16 = vld [vmem:[#allocation2 + $0x8] sm:$0xff]  ;;  %1014 = vrot.lane.b32.xlu1 %v1000_v15, %s2236_s11 }
 0x657   :  { %1036 = vrot.lane.b32.xlu0 %v994_v16, %s2237_s26 }
 0x658   :  { %v966_v17 = vpop.f32.mrf.mxu0 }
 0x659   :  { %v2134_v18 = vpop.eup %2133  ;;  %v967_v23 = vadd.f32 %v2577_v35, %v966_v17 }
 0x65a   :  { %v983_v26 = vmul.f32 %v2134_v18, %v2319_v51 }
 0x65b   :  { %2135 = vtanh.f32 %v967_v23 }
 0x65c   :  { %989 = vst.msk [vmem:[#allocation2 + $0x14] sm:$0xff] %vm225_vm4, %v983_v26 }
 0x660   :  { %v969_v32 = vpop.f32.mrf.mxu0 }
 0x661   :  { %v2136_v29 = vpop.eup %2135  ;;  %v970_v31 = vadd.f32 %v2577_v35, %v969_v32 }
 0x662   :  { %v984_v33 = vmul.f32 %v2136_v29, %v2313_v45 }
 0x663   :  { %2137 = vtanh.f32 %v970_v31  ;;  %v995_v43 = vld [vmem:[#allocation2 + $0x10] sm:$0xff] }
 0x664   :  { %v1001_v50 = vld [vmem:[#allocation2 + $0x14] sm:$0xff]  ;;  %990 = vst.msk [vmem:[#allocation2 + $0x1c] sm:$0xff] %vm225_vm4, %v984_v33  ;;  %1038 = vrot.lane.b32.xlu2 %v995_v43, %s2237_s26 }
 0x665   :  { %1016 = vrot.lane.b32.xlu0 %v1001_v50, %s2236_s11 }
 0x668   :  { %v972_v52 = vpop.f32.mrf.mxu0 }
 0x669   :  { %v2138_v56 = vpop.eup %2137  ;;  %v973_v20 = vadd.f32 %v2577_v35, %v972_v52 }
 0x66a   :  { %991 = vst.msk [vmem:[#allocation2 + $0x24] sm:$0xff] %vm225_vm4, %v2138_v56 }
 0x66b   :  { %2139 = vtanh.f32 %v973_v20  ;;  %v996_v21 = vld [vmem:[#allocation2 + $0x18] sm:$0xff] }
 0x66c   :  { %v1002_v19 = vld [vmem:[#allocation2 + $0x1c] sm:$0xff]  ;;  %1040 = vrot.lane.b32.xlu1 %v996_v21, %s2237_s26 }
 0x66d   :  { %1018 = vrot.lane.b32.xlu2 %v1002_v19, %s2236_s11 }
 0x671   :  { %v2140_v22 = vpop.eup %2139  ;;  %v997_v24 = vld [vmem:[#allocation2 + $0x20] sm:$0xff] }
 0x672   :  { %v986_v25 = vmul.f32 %v2140_v22, %v2319_v51  ;;  %1042 = vrot.lane.b32.xlu0 %v997_v24, %s2237_s26  ;;  %v1003_v27 = vld [vmem:[#allocation2 + $0x24] sm:$0xff] }
 0x674   :  { %992 = vst.msk [vmem:[#allocation2 + $0x2c] sm:$0xff] %vm225_vm4, %v986_v25  ;;  %1020 = vrot.lane.b32.xlu1 %v1003_v27, %s2236_s11 }
 0x67b   :  { %v1005_v35 = vld [vmem:[#allocation2 + $0x30] sm:$0xff]  ;;  %v998_v30 = vld [vmem:[#allocation2 + $0x28] sm:$0xff] }
 0x67c   :  { %v1004_v28 = vld [vmem:[#allocation2 + $0x2c] sm:$0xff]  ;;  %1046 = vrot.lane.b32.xlu1 %v1005_v35, %s2237_s26  ;;  %1044 = vrot.lane.b32.xlu2 %v998_v30, %s2237_s26 }
 0x67d   :  { %1022 = vrot.lane.b32.xlu0 %v1004_v28, %s2236_s11 }
 0x6aa   :  { %v1013_v34 = vpop.permute.xlu2 %1012 }
 0x6ab   :  { %v1054_v40 = vsel %vm225_vm4, %v993_v39, %v1013_v34 }
 0x6be   :  { %v1039_v47 = vpop.permute.xlu2 %1038 }
 0x6c7   :  { %v1019_v62 = vpop.permute.xlu2 %1018 }
 0x6c8   :  { %v1015_v44 = vpop.permute.xlu1 %1014  ;;  %v1057_v0 = vsel %vm225_vm4, %v996_v21, %v1019_v62 }
 0x6c9   :  { %v1037_v41 = vpop.permute.xlu0 %1036  ;;  %v1055_v46 = vsel %vm225_vm4, %v994_v16, %v1015_v44 }
 0x6ca   :  { %v1060_v42 = vsel %vm469_vm2, %v1054_v40, %v1037_v41  ;;  %v1061_v48 = vsel %vm469_vm2, %v1055_v46, %v1039_v47 }
 0x6cb   :  { %1996 = vmatmul.msk.f32.vlgmr.msrb.gmra.mxu2 %vm477_vm6, %v1060_v42 }
 0x6d3   :  { %1997 = vmatmul.msk.f32.gmra.mxu2 %vm477_vm6, %v1061_v48 }
 0x6d6   :  { %v1045_v55 = vpop.permute.xlu2 %1044 }
 0x6d7   :  { %v1017_v53 = vpop.permute.xlu0 %1016 }
 0x6d8   :  { %v1056_v54 = vsel %vm225_vm4, %v995_v43, %v1017_v53 }
 0x6de   :  { %v1041_v57 = vpop.permute.xlu1 %1040 }
 0x6df   :  { %v1062_v61 = vsel %vm469_vm2, %v1056_v54, %v1041_v57 }
 0x6e0   :  { %1998 = vmatmul.msk.f32.gmra.mxu2 %vm477_vm6, %v1062_v61 }
 0x6e4   :  { %v1043_v63 = vpop.permute.xlu0 %1042 }
 0x6e5   :  { %v1063_v2 = vsel %vm469_vm2, %v1057_v0, %v1043_v63 }
 0x6e6   :  { %v1021_v3 = vpop.permute.xlu1 %1020 }
 0x6e7   :  { %v1058_v4 = vsel %vm225_vm4, %v997_v24, %v1021_v3 }
 0x6e8   :  { %1999 = vmatmul.msk.f32.gmra.mxu2 %vm477_vm6, %v1063_v2  ;;  %v1064_v6 = vsel %vm469_vm2, %v1058_v4, %v1045_v55 }
 0x6ee   :  { %v1047_v7 = vpop.permute.xlu1 %1046 }
 0x6ef   :  { %v1023_v5 = vpop.permute.xlu0 %1022 }
 0x6f0   :  { %2000 = vmatmul.msk.f32.gmra.mxu2 %vm477_vm6, %v1064_v6  ;;  %v1059_v1 = vsel %vm225_vm4, %v998_v30, %v1023_v5 }
 0x6f1   :  { %v1065_v8 = vsel %vm469_vm2, %v1059_v1, %v1047_v7 }
 0x6f8   :  { %2001 = vmatmul.msk.f32.gmra.mxu2 %vm477_vm6, %v1065_v8 }
 0x74e   :  { %v1101_v10 = vpop.f32.mrf.mxu2 }
 0x74f   :  { %v1102_v11 = vadd.f32 %v2684_v13, %v1101_v10 }
 0x751   :  { %2141 = vtanh.f32 %v1102_v11 }
 0x756   :  { %v1104_v9 = vpop.f32.mrf.mxu2 }
 0x757   :  { %v2142_v12 = vpop.eup %2141  ;;  %v1105_v14 = vadd.f32 %v2684_v13, %v1104_v9 }
 0x758   :  { %v1125_v15 = vmul.f32 %v2142_v12, %v2313_v45 }
 0x759   :  { %2143 = vtanh.f32 %v1105_v14 }
 0x75a   :  { %1131 = vst.msk [vmem:[#allocation2 + $0x4] sm:$0xff] %vm225_vm4, %v1125_v15 }
 0x75f   :  { %v2144_v16 = vpop.eup %2143 }
 0x760   :  { %1132 = vst.msk [vmem:[#allocation2 + $0xc] sm:$0xff] %vm225_vm4, %v2144_v16 }
 0x761   :  { %v1143_v17 = vld [vmem:[#allocation2 + $0x4] sm:$0xff] }
 0x762   :  { %1161 = vrot.lane.b32.xlu2 %v1143_v17, %s2236_s11  ;;  %v1137_v44 = vld [vmem:[#allocation2 + $0x3] sm:$0xff] }
 0x763   :  { %v1107_v18 = vpop.f32.mrf.mxu2 }
 0x764   :  { %v1108_v32 = vadd.f32 %v2684_v13, %v1107_v18 }
 0x766   :  { %2145 = vtanh.f32 %v1108_v32 }
 0x767   :  { %v1144_v23 = vld [vmem:[#allocation2 + $0xc] sm:$0xff] }
 0x768   :  { %v1149_v26 = vld [vmem:[#allocation2 + $0x5] sm:$0xff]  ;;  %1163 = vrot.lane.b32.xlu1 %v1144_v23, %s2236_s11 }
 0x769   :  { %1185 = vrot.lane.b32.xlu0 %v1149_v26, %s2237_s26  ;;  %v1138_v54 = vld [vmem:[#allocation2 + $0xb] sm:$0xff] }
 0x76b   :  { %v1110_v29 = vpop.f32.mrf.mxu2 }
 0x76c   :  { %v2146_v31 = vpop.eup %2145  ;;  %v1111_v33 = vadd.f32 %v2684_v13, %v1110_v29 }
 0x76d   :  { %v1127_v43 = vmul.f32 %v2146_v31, %v2319_v51 }
 0x76e   :  { %2147 = vtanh.f32 %v1111_v33 }
 0x76f   :  { %1133 = vst.msk [vmem:[#allocation2 + $0x14] sm:$0xff] %vm225_vm4, %v1127_v43 }
 0x773   :  { %v1113_v50 = vpop.f32.mrf.mxu2 }
 0x774   :  { %v2148_v52 = vpop.eup %2147  ;;  %v1114_v56 = vadd.f32 %v2684_v13, %v1113_v50 }
 0x775   :  { %v1128_v20 = vmul.f32 %v2148_v52, %v2313_v45 }
 0x776   :  { %2149 = vtanh.f32 %v1114_v56  ;;  %v1145_v21 = vld [vmem:[#allocation2 + $0x14] sm:$0xff] }
 0x777   :  { %v1150_v19 = vld [vmem:[#allocation2 + $0xd] sm:$0xff]  ;;  %1134 = vst.msk [vmem:[#allocation2 + $0x1c] sm:$0xff] %vm225_vm4, %v1128_v20  ;;  %1165 = vrot.lane.b32.xlu0 %v1145_v21, %s2236_s11 }
 0x778   :  { %1187 = vrot.lane.b32.xlu2 %v1150_v19, %s2237_s26  ;;  %v1139_v0 = vld [vmem:[#allocation2 + $0x13] sm:$0xff] }
 0x77b   :  { %v1116_v22 = vpop.f32.mrf.mxu2 }
 0x77c   :  { %v2150_v24 = vpop.eup %2149  ;;  %v1117_v25 = vadd.f32 %v2684_v13, %v1116_v22 }
 0x77d   :  { %1135 = vst.msk [vmem:[#allocation2 + $0x24] sm:$0xff] %vm225_vm4, %v2150_v24 }
 0x77e   :  { %2151 = vtanh.f32 %v1117_v25  ;;  %v1151_v27 = vld [vmem:[#allocation2 + $0x15] sm:$0xff] }
 0x77f   :  { %v1146_v35 = vld [vmem:[#allocation2 + $0x1c] sm:$0xff]  ;;  %1189 = vrot.lane.b32.xlu1 %v1151_v27, %s2237_s26 }
 0x780   :  { %1167 = vrot.lane.b32.xlu2 %v1146_v35, %s2236_s11  ;;  %v1140_v5 = vld [vmem:[#allocation2 + $0x1b] sm:$0xff] }
 0x784   :  { %v2152_v28 = vpop.eup %2151  ;;  %v1152_v30 = vld [vmem:[#allocation2 + $0x1d] sm:$0xff] }
 0x785   :  { %v1130_v34 = vmul.f32 %v2152_v28, %v2319_v51  ;;  %1191 = vrot.lane.b32.xlu0 %v1152_v30, %s2237_s26  ;;  %v1147_v39 = vld [vmem:[#allocation2 + $0x24] sm:$0xff] }
 0x786   :  { %v1141_v10 = vld [vmem:[#allocation2 + $0x23] sm:$0xff] }
 0x787   :  { %1136 = vst.msk [vmem:[#allocation2 + $0x2c] sm:$0xff] %vm225_vm4, %v1130_v34  ;;  %1169 = vrot.lane.b32.xlu1 %v1147_v39, %s2236_s11 }
 0x78e   :  { %v1154_v13 = vld [vmem:[#allocation2 + $0x2d] sm:$0xff]  ;;  %v1153_v40 = vld [vmem:[#allocation2 + $0x25] sm:$0xff] }
 0x78f   :  { %v1148_v41 = vld [vmem:[#allocation2 + $0x2c] sm:$0xff]  ;;  %1195 = vrot.lane.b32.xlu1 %v1154_v13, %s2237_s26  ;;  %1193 = vrot.lane.b32.xlu2 %v1153_v40, %s2237_s26 }
 0x790   :  { %1171 = vrot.lane.b32.xlu0 %v1148_v41, %s2236_s11  ;;  %v1142_v15 = vld [vmem:[#allocation2 + $0x2b] sm:$0xff] }
 0x7bc   :  { %v1162_v42 = vpop.permute.xlu2 %1161 }
 0x7bd   :  { %v1203_v46 = vsel %vm225_vm4, %v1137_v44, %v1162_v42 }
 0x7d2   :  { %v1188_v61 = vpop.permute.xlu2 %1187 }
 0x7da   :  { %v1164_v53 = vpop.permute.xlu1 %1163  ;;  %v1168_v55 = vpop.permute.xlu2 %1167 }
 0x7db   :  { %v1186_v47 = vpop.permute.xlu0 %1185  ;;  %v1204_v57 = vsel %vm225_vm4, %v1138_v54, %v1164_v53  ;;  %v1206_v7 = vsel %vm225_vm4, %v1140_v5, %v1168_v55 }
 0x7dc   :  { %v1209_v48 = vsel %vm469_vm2, %v1203_v46, %v1186_v47  ;;  %v1210_v62 = vsel %vm469_vm2, %v1204_v57, %v1188_v61 }
 0x7dd   :  { %2002 = vmatmul.msk.f32.vlgmr.msra.gmra.mxu3 %vm477_vm6, %v1209_v48 }
 0x7e5   :  { %2003 = vmatmul.msk.f32.gmra.mxu3 %vm477_vm6, %v1210_v62 }
 0x7e9   :  { %v1166_v63 = vpop.permute.xlu0 %1165  ;;  %v1194_v9 = vpop.permute.xlu2 %1193 }
 0x7ea   :  { %v1205_v2 = vsel %vm225_vm4, %v1139_v0, %v1166_v63 }
 0x7f1   :  { %v1190_v3 = vpop.permute.xlu1 %1189 }
 0x7f2   :  { %v1211_v4 = vsel %vm469_vm2, %v1205_v2, %v1190_v3 }
 0x7f3   :  { %2004 = vmatmul.msk.f32.gmra.mxu3 %vm477_vm6, %v1211_v4 }
 0x7f7   :  { %v1192_v6 = vpop.permute.xlu0 %1191 }
 0x7f8   :  { %v1212_v1 = vsel %vm469_vm2, %v1206_v7, %v1192_v6 }
 0x7f9   :  { %v1170_v8 = vpop.permute.xlu1 %1169 }
 0x7fa   :  { %v1207_v11 = vsel %vm225_vm4, %v1141_v10, %v1170_v8 }
 0x7fb   :  { %2005 = vmatmul.msk.f32.gmra.mxu3 %vm477_vm6, %v1212_v1  ;;  %v1213_v12 = vsel %vm469_vm2, %v1207_v11, %v1194_v9 }
 0x801   :  { %v1196_v16 = vpop.permute.xlu1 %1195 }
 0x802   :  { %v1172_v14 = vpop.permute.xlu0 %1171 }
 0x803   :  { %2006 = vmatmul.msk.f32.gmra.mxu3 %vm477_vm6, %v1213_v12  ;;  %v1208_v17 = vsel %vm225_vm4, %v1142_v15, %v1172_v14 }
 0x804   :  { %v1214_v18 = vsel %vm469_vm2, %v1208_v17, %v1196_v16 }
 0x80b   :  { %2007 = vmatmul.msk.f32.gmra.mxu3 %vm477_vm6, %v1214_v18 }
 0x860   :  { %v1250_v23 = vpop.f32.mrf.mxu3 }
 0x861   :  { %v1251_v26 = vadd.f32 %v2783_v49, %v1250_v23 }
 0x863   :  { %2153 = vtanh.f32 %v1251_v26 }
 0x868   :  { %v1253_v32 = vpop.f32.mrf.mxu3 }
 0x869   :  { %v2154_v29 = vpop.eup %2153  ;;  %v1254_v31 = vadd.f32 %v2783_v49, %v1253_v32 }
 0x86a   :  { %v1274_v33 = vmul.f32 %v2154_v29, %v2313_v45 }
 0x86b   :  { %2155 = vtanh.f32 %v1254_v31 }
 0x86c   :  { %1280 = vst.msk [vmem:[#allocation2 + $0x4] sm:$0xff] %vm225_vm4, %v1274_v33 }
 0x871   :  { %v2156_v43 = vpop.eup %2155 }
 0x872   :  { %1281 = vst.msk [vmem:[#allocation2 + $0xc] sm:$0xff] %vm225_vm4, %v2156_v43 }
 0x873   :  { %v1292_v50 = vld [vmem:[#allocation2 + $0x4] sm:$0xff] }
 0x874   :  { %1310 = vrot.lane.b32.xlu2 %v1292_v50, %s2236_s11  ;;  %v1286_v62 = vld [vmem:[#allocation2 + $0x2] sm:$0xff] }
 0x876   :  { %v1256_v20 = vpop.f32.mrf.mxu3 }
 0x877   :  { %v1257_v21 = vadd.f32 %v2783_v49, %v1256_v20 }
 0x879   :  { %v1293_v52 = vld [vmem:[#allocation2 + $0xc] sm:$0xff]  ;;  %2157 = vtanh.f32 %v1257_v21 }
 0x87a   :  { %v1298_v56 = vld [vmem:[#allocation2 + $0x6] sm:$0xff]  ;;  %1312 = vrot.lane.b32.xlu1 %v1293_v52, %s2236_s11 }
 0x87b   :  { %1334 = vrot.lane.b32.xlu0 %v1298_v56, %s2237_s26  ;;  %v1287_v4 = vld [vmem:[#allocation2 + $0xa] sm:$0xff]  ;;  %v2203_v56 = vld [vmem:[%s3092_s1 + $0xe0] ss:$0 sm:$0xff] }
 0x87e   :  { %v1259_v19 = vpop.f32.mrf.mxu3 }
 0x87f   :  { %v2158_v22 = vpop.eup %2157  ;;  %v1260_v24 = vadd.f32 %v2783_v49, %v1259_v19 }
 0x880   :  { %v1276_v25 = vmul.f32 %v2158_v22, %v2319_v51 }
 0x881   :  { %2159 = vtanh.f32 %v1260_v24 }
 0x882   :  { %1282 = vst.msk [vmem:[#allocation2 + $0x14] sm:$0xff] %vm225_vm4, %v1276_v25 }
 0x886   :  { %v1262_v27 = vpop.f32.mrf.mxu3 }
 0x887   :  { %v2160_v35 = vpop.eup %2159  ;;  %v1263_v28 = vadd.f32 %v2783_v49, %v1262_v27 }
 0x888   :  { %v1277_v30 = vmul.f32 %v2160_v35, %v2313_v45 }
 0x889   :  { %2161 = vtanh.f32 %v1263_v28  ;;  %v1299_v34 = vld [vmem:[#allocation2 + $0xe] sm:$0xff] }
 0x88a   :  { %v1294_v39 = vld [vmem:[#allocation2 + $0x14] sm:$0xff]  ;;  %1283 = vst.msk [vmem:[#allocation2 + $0x1c] sm:$0xff] %vm225_vm4, %v1277_v30  ;;  %1336 = vrot.lane.b32.xlu2 %v1299_v34, %s2237_s26 }
 0x88b   :  { %1314 = vrot.lane.b32.xlu0 %v1294_v39, %s2236_s11  ;;  %v1288_v1 = vld [vmem:[#allocation2 + $0x12] sm:$0xff] }
 0x88e   :  { %v1265_v13 = vpop.f32.mrf.mxu3 }
 0x88f   :  { %v2162_v40 = vpop.eup %2161  ;;  %v1266_v41 = vadd.f32 %v2783_v49, %v1265_v13 }
 0x890   :  { %1284 = vst.msk [vmem:[#allocation2 + $0x24] sm:$0xff] %vm225_vm4, %v2162_v40 }
 0x891   :  { %2163 = vtanh.f32 %v1266_v41  ;;  %v1300_v42 = vld [vmem:[#allocation2 + $0x16] sm:$0xff] }
 0x892   :  { %v1295_v44 = vld [vmem:[#allocation2 + $0x1c] sm:$0xff]  ;;  %1338 = vrot.lane.b32.xlu1 %v1300_v42, %s2237_s26 }
 0x893   :  { %1316 = vrot.lane.b32.xlu2 %v1295_v44, %s2236_s11  ;;  %v1289_v14 = vld [vmem:[#allocation2 + $0x1a] sm:$0xff] }
 0x897   :  { %v2164_v46 = vpop.eup %2163  ;;  %v1301_v47 = vld [vmem:[#allocation2 + $0x1e] sm:$0xff] }
 0x898   :  { %v1279_v48 = vmul.f32 %v2164_v46, %v2319_v51  ;;  %1340 = vrot.lane.b32.xlu0 %v1301_v47, %s2237_s26  ;;  %v1296_v53 = vld [vmem:[#allocation2 + $0x24] sm:$0xff] }
 0x899   :  { %v1290_v18 = vld [vmem:[#allocation2 + $0x22] sm:$0xff] }
 0x89a   :  { %1285 = vst.msk [vmem:[#allocation2 + $0x2c] sm:$0xff] %vm225_vm4, %v1279_v48  ;;  %1318 = vrot.lane.b32.xlu1 %v1296_v53, %s2236_s11 }
 0x8a1   :  { %v1303_v49 = vld [vmem:[#allocation2 + $0x2e] sm:$0xff]  ;;  %v1302_v54 = vld [vmem:[#allocation2 + $0x26] sm:$0xff] }
 0x8a2   :  { %v1297_v57 = vld [vmem:[#allocation2 + $0x2c] sm:$0xff]  ;;  %1344 = vrot.lane.b32.xlu1 %v1303_v49, %s2237_s26  ;;  %1342 = vrot.lane.b32.xlu2 %v1302_v54, %s2237_s26 }
 0x8a3   :  { %1320 = vrot.lane.b32.xlu0 %v1297_v57, %s2236_s11  ;;  %v1291_v31 = vld [vmem:[#allocation2 + $0x2a] sm:$0xff] }
 0x8ce   :  { %v1311_v61 = vpop.permute.xlu2 %1310 }
 0x8cf   :  { %v1352_v63 = vsel %vm225_vm4, %v1286_v62, %v1311_v61 }
 0x8e4   :  { %v1337_v6 = vpop.permute.xlu2 %1336 }
 0x8ec   :  { %v1313_v3 = vpop.permute.xlu1 %1312 }
 0x8ed   :  { %v1335_v0 = vpop.permute.xlu0 %1334  ;;  %v1353_v55 = vsel %vm225_vm4, %v1287_v4, %v1313_v3  ;;  %v1317_v9 = vpop.permute.xlu2 %1316 }
 0x8ee   :  { %v1358_v2 = vsel %vm469_vm2, %v1352_v63, %v1335_v0  ;;  %v1359_v5 = vsel %vm469_vm2, %v1353_v55, %v1337_v6  ;;  %v1355_v15 = vsel %vm225_vm4, %v1289_v14, %v1317_v9 }
 0x8ef   :  { %2008 = vmatmul.msk.f32.vlgmr.msra.gmra.mxu1 %vm477_vm6, %v1358_v2 }
 0x8f7   :  { %2009 = vmatmul.msk.f32.gmra.mxu1 %vm477_vm6, %v1359_v5 }
 0x8fc   :  { %v1343_v26 = vpop.permute.xlu2 %1342 }
 0x8fd   :  { %v1315_v7 = vpop.permute.xlu0 %1314 }
 0x8fe   :  { %v1354_v8 = vsel %vm225_vm4, %v1288_v1, %v1315_v7 }
 0x904   :  { %v1339_v10 = vpop.permute.xlu1 %1338 }
 0x905   :  { %v1360_v11 = vsel %vm469_vm2, %v1354_v8, %v1339_v10 }
 0x906   :  { %2010 = vmatmul.msk.f32.gmra.mxu1 %vm477_vm6, %v1360_v11 }
 0x90a   :  { %v1341_v12 = vpop.permute.xlu0 %1340 }
 0x90b   :  { %v1361_v16 = vsel %vm469_vm2, %v1355_v15, %v1341_v12 }
 0x90c   :  { %v1319_v17 = vpop.permute.xlu1 %1318 }
 0x90d   :  { %v1356_v23 = vsel %vm225_vm4, %v1290_v18, %v1319_v17 }
 0x90e   :  { %2011 = vmatmul.msk.f32.gmra.mxu1 %vm477_vm6, %v1361_v16  ;;  %v1362_v32 = vsel %vm469_vm2, %v1356_v23, %v1343_v26 }
 0x914   :  { %v1345_v33 = vpop.permute.xlu1 %1344 }
 0x915   :  { %v1321_v29 = vpop.permute.xlu0 %1320 }
 0x916   :  { %2012 = vmatmul.msk.f32.gmra.mxu1 %vm477_vm6, %v1362_v32  ;;  %v1357_v43 = vsel %vm225_vm4, %v1291_v31, %v1321_v29 }
 0x917   :  { %v1363_v50 = vsel %vm469_vm2, %v1357_v43, %v1345_v33 }
 0x91e   :  { %2013 = vmatmul.msk.f32.gmra.mxu1 %vm477_vm6, %v1363_v50 }
 0x96c   :  { %v1399_v52 = vpop.f32.mrf.mxu1 }
 0x96d   :  { %v1400_v20 = vadd.f32 %v2203_v56, %v1399_v52 }
 0x96f   :  { %2165 = vtanh.f32 %v1400_v20 }
 0x974   :  { %v1402_v21 = vpop.f32.mrf.mxu1 }
 0x975   :  { %v2166_v19 = vpop.eup %2165  ;;  %v1403_v22 = vadd.f32 %v2203_v56, %v1402_v21 }
 0x976   :  { %v1423_v24 = vmul.f32 %v2166_v19, %v2313_v45 }
 0x977   :  { %2167 = vtanh.f32 %v1403_v22  ;;  %v2204_v22 = vld [vmem:[%s3092_s1 + $0x148] ss:$0 sm:$0xff] }
 0x978   :  { %1429 = vst.msk [vmem:[#allocation2 + $0x4] sm:$0xff] %vm225_vm4, %v1423_v24 }
 0x97d   :  { %v2168_v25 = vpop.eup %2167 }
 0x97e   :  { %1430 = vst.msk [vmem:[#allocation2 + $0xc] sm:$0xff] %vm225_vm4, %v2168_v25 }
 0x97f   :  { %v1441_v27 = vld [vmem:[#allocation2 + $0x4] sm:$0xff] }
 0x980   :  { %1454 = vrot.lane.b32.xlu2 %v1441_v27, %s2236_s11  ;;  %v1435_v7 = vld [vmem:[#allocation2] sm:$0xff] }
 0x983   :  { %v1405_v30 = vpop.f32.mrf.mxu1 }
 0x984   :  { %v1406_v34 = vadd.f32 %v2203_v56, %v1405_v30 }
 0x985   :  { %v1442_v35 = vld [vmem:[#allocation2 + $0xc] sm:$0xff] }
 0x986   :  { %v1436_v28 = vld [vmem:[#allocation2 + $0x8] sm:$0xff]  ;;  %1456 = vrot.lane.b32.xlu1 %v1442_v35, %s2236_s11  ;;  %2169 = vtanh.f32 %v1406_v34 }
 0x987   :  { %1478 = vrot.lane.b32.xlu0 %v1436_v28, %s2237_s26 }
 0x98b   :  { %v1408_v39 = vpop.f32.mrf.mxu1 }
 0x98c   :  { %v2170_v13 = vpop.eup %2169  ;;  %v1409_v40 = vadd.f32 %v2203_v56, %v1408_v39 }
 0x98d   :  { %v1425_v41 = vmul.f32 %v2170_v13, %v2319_v51 }
 0x98e   :  { %2171 = vtanh.f32 %v1409_v40 }
 0x98f   :  { %1431 = vst.msk [vmem:[#allocation2 + $0x14] sm:$0xff] %vm225_vm4, %v1425_v41 }
 0x993   :  { %v1411_v42 = vpop.f32.mrf.mxu1 }
 0x994   :  { %v2172_v44 = vpop.eup %2171  ;;  %v1412_v46 = vadd.f32 %v2203_v56, %v1411_v42 }
 0x995   :  { %v1426_v47 = vmul.f32 %v2172_v44, %v2313_v45 }
 0x996   :  { %2173 = vtanh.f32 %v1412_v46  ;;  %v1437_v48 = vld [vmem:[#allocation2 + $0x10] sm:$0xff] }
 0x997   :  { %v1443_v53 = vld [vmem:[#allocation2 + $0x14] sm:$0xff]  ;;  %1432 = vst.msk [vmem:[#allocation2 + $0x1c] sm:$0xff] %vm225_vm4, %v1426_v47  ;;  %1480 = vrot.lane.b32.xlu2 %v1437_v48, %s2237_s26 }
 0x998   :  { %1458 = vrot.lane.b32.xlu0 %v1443_v53, %s2236_s11 }
 0x99b   :  { %v1414_v49 = vpop.f32.mrf.mxu1 }
 0x99c   :  { %v2174_v54 = vpop.eup %2173  ;;  %v1415_v57 = vadd.f32 %v2203_v56, %v1414_v49 }
 0x99d   :  { %1433 = vst.msk [vmem:[#allocation2 + $0x24] sm:$0xff] %vm225_vm4, %v2174_v54 }
 0x99e   :  { %2175 = vtanh.f32 %v1415_v57  ;;  %v1438_v61 = vld [vmem:[#allocation2 + $0x18] sm:$0xff] }
 0x99f   :  { %v1444_v62 = vld [vmem:[#allocation2 + $0x1c] sm:$0xff]  ;;  %1482 = vrot.lane.b32.xlu1 %v1438_v61, %s2237_s26 }
 0x9a0   :  { %1460 = vrot.lane.b32.xlu2 %v1444_v62, %s2236_s11 }
 0x9a4   :  { %v2176_v63 = vpop.eup %2175  ;;  %v1439_v0 = vld [vmem:[#allocation2 + $0x20] sm:$0xff] }
 0x9a5   :  { %v1428_v2 = vmul.f32 %v2176_v63, %v2319_v51  ;;  %1484 = vrot.lane.b32.xlu0 %v1439_v0, %s2237_s26  ;;  %v1445_v3 = vld [vmem:[#allocation2 + $0x24] sm:$0xff] }
 0x9a7   :  { %1434 = vst.msk [vmem:[#allocation2 + $0x2c] sm:$0xff] %vm225_vm4, %v1428_v2  ;;  %1462 = vrot.lane.b32.xlu1 %v1445_v3, %s2236_s11 }
 0x9ae   :  { %v1447_v4 = vld [vmem:[#allocation2 + $0x30] sm:$0xff]  ;;  %v1440_v6 = vld [vmem:[#allocation2 + $0x28] sm:$0xff] }
 0x9af   :  { %v1446_v55 = vld [vmem:[#allocation2 + $0x2c] sm:$0xff]  ;;  %1488 = vrot.lane.b32.xlu1 %v1447_v4, %s2237_s26  ;;  %1486 = vrot.lane.b32.xlu2 %v1440_v6, %s2237_s26 }
 0x9b0   :  { %1464 = vrot.lane.b32.xlu0 %v1446_v55, %s2236_s11 }
 0x9da   :  { %v1455_v5 = vpop.permute.xlu2 %1454 }
 0x9db   :  { %v1496_v1 = vsel %vm225_vm4, %v1435_v7, %v1455_v5 }
 0x9f1   :  { %v1481_v12 = vpop.permute.xlu2 %1480 }
 0x9f8   :  { %v1457_v11 = vpop.permute.xlu1 %1456 }
 0x9f9   :  { %v1479_v8 = vpop.permute.xlu0 %1478  ;;  %v1497_v9 = vsel %vm225_vm4, %v1436_v28, %v1457_v11 }
 0x9fa   :  { %v1502_v10 = vsel %vm469_vm2, %v1496_v1, %v1479_v8  ;;  %v1503_v14 = vsel %vm469_vm2, %v1497_v9, %v1481_v12  ;;  %v1461_v23 = vpop.permute.xlu2 %1460 }
 0x9fb   :  { %2014 = vmatmul.msk.f32.vlgmr.msra.gmra.mxu0 %vm477_vm6, %v1502_v10  ;;  %v1499_v32 = vsel %vm225_vm4, %v1438_v61, %v1461_v23 }
 0xa03   :  { %2015 = vmatmul.msk.f32.gmra.mxu0 %vm477_vm6, %v1503_v14 }
 0xa09   :  { %v1487_v43 = vpop.permute.xlu2 %1486 }
 0xa0a   :  { %v1459_v15 = vpop.permute.xlu0 %1458 }
 0xa0b   :  { %v1498_v16 = vsel %vm225_vm4, %v1437_v48, %v1459_v15  ;;  %v2238_v48 = vmov 32  }
 0xa0c   :  { %2057 = vset.pattern.permute.xlu2 %v2238_v48  ;;  %2059 = vset.pattern.permute.xlu1 %v2238_v48 }
 0xa0d   :  { %2058 = vset.pattern.permute.xlu0 %v2238_v48 }
 0xa11   :  { %v1483_v17 = vpop.permute.xlu1 %1482 }
 0xa12   :  { %v1504_v18 = vsel %vm469_vm2, %v1498_v16, %v1483_v17 }
 0xa13   :  { %2016 = vmatmul.msk.f32.gmra.mxu0 %vm477_vm6, %v1504_v18 }
 0xa17   :  { %v1485_v26 = vpop.permute.xlu0 %1484 }
 0xa18   :  { %v1505_v29 = vsel %vm469_vm2, %v1499_v32, %v1485_v26 }
 0xa19   :  { %v1463_v31 = vpop.permute.xlu1 %1462 }
 0xa1a   :  { %v1500_v33 = vsel %vm225_vm4, %v1439_v0, %v1463_v31 }
 0xa1b   :  { %2017 = vmatmul.msk.f32.gmra.mxu0 %vm477_vm6, %v1505_v29  ;;  %v1506_v50 = vsel %vm469_vm2, %v1500_v33, %v1487_v43 }
 0xa21   :  { %v1489_v56 = vpop.permute.xlu1 %1488 }
 0xa22   :  { %v1465_v52 = vpop.permute.xlu0 %1464 }
 0xa23   :  { %2018 = vmatmul.msk.f32.gmra.mxu0 %vm477_vm6, %v1506_v50  ;;  %v1501_v20 = vsel %vm225_vm4, %v1440_v6, %v1465_v52 }
 0xa24   :  { %v1507_v21 = vsel %vm469_vm2, %v1501_v20, %v1489_v56 }
 0xa2b   :  { %2019 = vmatmul.msk.f32.gmra.mxu0 %vm477_vm6, %v1507_v21 }
 0xa78   :  { %v1543_v19 = vpop.f32.mrf.mxu0 }
 0xa79   :  { %v1544_v24 = vadd.f32 %v2204_v22, %v1543_v19 }
 0xa7b   :  { %2177 = vtanh.f32 %v1544_v24 }
 0xa80   :  { %v1546_v25 = vpop.f32.mrf.mxu0 }
 0xa81   :  { %v2178_v27 = vpop.eup %2177  ;;  %v1547_v35 = vadd.f32 %v2204_v22, %v1546_v25  ;;  %v70_v25 = vld [vmem:[%s3092_s1 + $0x1d0] sm:$0xff] }
 0xa82   :  { %v1567_v28 = vmul.f32 %v2178_v27, %v2313_v45  ;;  %1925 = vmatpush.msrb.mxu3 %v70_v25 }
 0xa83   :  { %2179 = vtanh.f32 %v1547_v35  ;;  %v69_v35 = vld [vmem:[%s3092_s1 + $0x1c8] sm:$0xff] }
 0xa84   :  { %1573 = vst.msk [vmem:[#allocation2 + $0x4] sm:$0xff] %vm225_vm4, %v1567_v28  ;;  %1926 = vmatpush.msrb.mxu3 %v69_v35 }
 0xa89   :  { %v2180_v30 = vpop.eup %2179 }
 0xa8a   :  { %1574 = vst.msk [vmem:[#allocation2 + $0xc] sm:$0xff] %vm225_vm4, %v2180_v30  ;;  %v2205_v30 = vld [vmem:[%s3092_s1 + $0x1b0] ss:$0 sm:$0xff] }
 0xa8b   :  { %v1585_v34 = vld [vmem:[#allocation2 + $0x4] sm:$0xff] }
 0xa8c   :  { %1603 = vrot.lane.b32.xlu2 %v1585_v34, %s2236_s11  ;;  %v1579_v10 = vld [vmem:[#allocation2 + $0x3] sm:$0xff] }
 0xa90   :  { %v1549_v40 = vpop.f32.mrf.mxu0 }
 0xa91   :  { %v1586_v39 = vld [vmem:[#allocation2 + $0xc] sm:$0xff]  ;;  %v1550_v41 = vadd.f32 %v2204_v22, %v1549_v40 }
 0xa92   :  { %v1591_v13 = vld [vmem:[#allocation2 + $0x5] sm:$0xff]  ;;  %1605 = vrot.lane.b32.xlu1 %v1586_v39, %s2236_s11 }
 0xa93   :  { %1627 = vrot.lane.b32.xlu0 %v1591_v13, %s2237_s26  ;;  %2181 = vtanh.f32 %v1550_v41  ;;  %v1580_v14 = vld [vmem:[#allocation2 + $0xb] sm:$0xff]  ;;  %v68_v41 = vld [vmem:[%s3092_s1 + $0x1c0] sm:$0xff] }
 0xa94   :  { %1927 = vmatpush.msrb.mxu3 %v68_v41 }
 0xa98   :  { %v1552_v42 = vpop.f32.mrf.mxu0 }
 0xa99   :  { %v2182_v44 = vpop.eup %2181  ;;  %v1553_v46 = vadd.f32 %v2204_v22, %v1552_v42  ;;  %v67_v42 = vld [vmem:[%s3092_s1 + $0x1b8] sm:$0xff] }
 0xa9a   :  { %v1569_v47 = vmul.f32 %v2182_v44, %v2319_v51  ;;  %1928 = vmatpush.msrb.mxu3 %v67_v42 }
 0xa9b   :  { %2183 = vtanh.f32 %v1553_v46 }
 0xa9c   :  { %1575 = vst.msk [vmem:[#allocation2 + $0x14] sm:$0xff] %vm225_vm4, %v1569_v47 }
 0xaa0   :  { %v1555_v53 = vpop.f32.mrf.mxu0 }
 0xaa1   :  { %v2184_v49 = vpop.eup %2183  ;;  %v1556_v54 = vadd.f32 %v2204_v22, %v1555_v53 }
 0xaa2   :  { %v1570_v57 = vmul.f32 %v2184_v49, %v2313_v45 }
 0xaa3   :  { %2185 = vtanh.f32 %v1556_v54  ;;  %v1587_v61 = vld [vmem:[#allocation2 + $0x14] sm:$0xff] }
 0xaa4   :  { %v1592_v62 = vld [vmem:[#allocation2 + $0xd] sm:$0xff]  ;;  %1576 = vst.msk [vmem:[#allocation2 + $0x1c] sm:$0xff] %vm225_vm4, %v1570_v57  ;;  %1607 = vrot.lane.b32.xlu0 %v1587_v61, %s2236_s11 }
 0xaa5   :  { %1629 = vrot.lane.b32.xlu2 %v1592_v62, %s2237_s26 }
 0xaa8   :  { %v1558_v63 = vpop.f32.mrf.mxu0 }
 0xaa9   :  { %v2186_v0 = vpop.eup %2185  ;;  %v1559_v2 = vadd.f32 %v2204_v22, %v1558_v63 }
 0xaaa   :  { %1577 = vst.msk [vmem:[#allocation2 + $0x24] sm:$0xff] %vm225_vm4, %v2186_v0 }
 0xaab   :  { %2187 = vtanh.f32 %v1559_v2  ;;  %v1593_v3 = vld [vmem:[#allocation2 + $0x15] sm:$0xff] }
 0xaac   :  { %v1588_v4 = vld [vmem:[#allocation2 + $0x1c] sm:$0xff]  ;;  %1631 = vrot.lane.b32.xlu1 %v1593_v3, %s2237_s26 }
 0xaad   :  { %1609 = vrot.lane.b32.xlu2 %v1588_v4, %s2236_s11  ;;  %v1582_v26 = vld [vmem:[#allocation2 + $0x1b] sm:$0xff] }
 0xab1   :  { %v2188_v45 = vpop.eup %2187  ;;  %v1594_v55 = vld [vmem:[#allocation2 + $0x1d] sm:$0xff] }
 0xab2   :  { %v1572_v6 = vmul.f32 %v2188_v45, %v2319_v51  ;;  %1633 = vrot.lane.b32.xlu0 %v1594_v55, %s2237_s26  ;;  %v1589_v5 = vld [vmem:[#allocation2 + $0x24] sm:$0xff] }
 0xab3   :  { %v1583_v33 = vld [vmem:[#allocation2 + $0x23] sm:$0xff] }
 0xab4   :  { %1578 = vst.msk [vmem:[#allocation2 + $0x2c] sm:$0xff] %vm225_vm4, %v1572_v6  ;;  %1611 = vrot.lane.b32.xlu1 %v1589_v5, %s2236_s11 }
 0xabb   :  { %v1596_v7 = vld [vmem:[#allocation2 + $0x2d] sm:$0xff]  ;;  %v1595_v1 = vld [vmem:[#allocation2 + $0x25] sm:$0xff] }
 0xabc   :  { %v1590_v8 = vld [vmem:[#allocation2 + $0x2c] sm:$0xff]  ;;  %1637 = vrot.lane.b32.xlu1 %v1596_v7, %s2237_s26  ;;  %1635 = vrot.lane.b32.xlu2 %v1595_v1, %s2237_s26 }
 0xabd   :  { %1613 = vrot.lane.b32.xlu0 %v1590_v8, %s2236_s11  ;;  %v1584_v20 = vld [vmem:[#allocation2 + $0x2b] sm:$0xff] }
 0xac4   :  { %1844 = vperm.xlu1 %2059, %v2479_v36   ;;  %1834 = vperm.xlu2 %2057, %v2482_v37  }
 0xac5   :  { %1839 = vperm.xlu0 %2058, %v2485_v38  }
 0xacc   :  { %1854 = vperm.xlu1 %2059, %v2547_v58   ;;  %1849 = vperm.xlu2 %2057, %v2550_v59  }
 0xad4   :  { %1859 = vperm.xlu2 %2057, %v2553_v60   ;;  %v1581_v60 = vld [vmem:[#allocation2 + $0x13] sm:$0xff] }
 0xae6   :  { %v1604_v51 = vpop.permute.xlu2 %1603 }
 0xae7   :  { %v1645_v11 = vsel %vm225_vm4, %v1579_v10, %v1604_v51 }
 0xaff   :  { %v1630_v38 = vpop.permute.xlu2 %1629 }
 0xb04   :  { %v1606_v36 = vpop.permute.xlu1 %1605 }
 0xb05   :  { %v1628_v9 = vpop.permute.xlu0 %1627  ;;  %v1646_v37 = vsel %vm225_vm4, %v1580_v14, %v1606_v36 }
 0xb06   :  { %v1651_v12 = vsel %vm469_vm2, %v1645_v11, %v1628_v9  ;;  %v1652_v58 = vsel %vm469_vm2, %v1646_v37, %v1630_v38 }
 0xb07   :  { %2020 = vmatmul.msk.f32.vlgmr.msra.gmra.mxu2 %vm477_vm6, %v1651_v12  ;;  %v1610_v18 = vpop.permute.xlu2 %1609 }
 0xb08   :  { %v1648_v32 = vsel %vm225_vm4, %v1582_v26, %v1610_v18 }
 0xb0f   :  { %2021 = vmatmul.msk.f32.gmra.mxu2 %vm477_vm6, %v1652_v58 }
 0xb16   :  { %v1608_v59 = vpop.permute.xlu0 %1607  ;;  %v1636_v50 = vpop.permute.xlu2 %1635 }
 0xb17   :  { %v1647_v15 = vsel %vm225_vm4, %v1581_v60, %v1608_v59 }
 0xb1e   :  { %v1632_v16 = vpop.permute.xlu1 %1631  ;;  %v1835_v47 = vpop.permute.xlu2 %1834 }
 0xb1f   :  { %v1653_v17 = vsel %vm469_vm2, %v1647_v15, %v1632_v16 }
 0xb20   :  { %2022 = vmatmul.msk.f32.gmra.mxu2 %vm477_vm6, %v1653_v17 }
 0xb24   :  { %v1634_v23 = vpop.permute.xlu0 %1633 }
 0xb25   :  { %v1654_v29 = vsel %vm469_vm2, %v1648_v32, %v1634_v23 }
 0xb26   :  { %v1612_v31 = vpop.permute.xlu1 %1611  ;;  %v1850_v55 = vpop.permute.xlu2 %1849 }
 0xb27   :  { %v1649_v43 = vsel %vm225_vm4, %v1583_v33, %v1612_v31 }
 0xb28   :  { %2023 = vmatmul.msk.f32.gmra.mxu2 %vm477_vm6, %v1654_v29  ;;  %v1655_v52 = vsel %vm469_vm2, %v1649_v43, %v1636_v50 }
 0xb2e   :  { %v1638_v21 = vpop.permute.xlu1 %1637  ;;  %v1860_v58 = vpop.permute.xlu2 %1859 }
 0xb2f   :  { %v1614_v56 = vpop.permute.xlu0 %1613 }
 0xb30   :  { %2024 = vmatmul.msk.f32.gmra.mxu2 %vm477_vm6, %v1655_v52  ;;  %v1650_v19 = vsel %vm225_vm4, %v1584_v20, %v1614_v56 }
 0xb31   :  { %v1656_v22 = vsel %vm469_vm2, %v1650_v19, %v1638_v21 }
 0xb36   :  { %v1845_v48 = vpop.permute.xlu1 %1844 }
 0xb37   :  { %v1840_v54 = vpop.permute.xlu0 %1839 }
 0xb38   :  { %2025 = vmatmul.msk.f32.gmra.mxu2 %vm477_vm6, %v1656_v22 }
 0xb3e   :  { %v1855_v10 = vpop.permute.xlu1 %1854 }
 0xb8a   :  { %v1692_v24 = vpop.f32.mrf.mxu2 }
 0xb8b   :  { %v1693_v13 = vadd.f32 %v2205_v30, %v1692_v24  ;;  %v2064_v24 = vld [vmem:[%s3092_s1 + $0x1d8] ss:$0 sm:$0xff] }
 0xb92   :  { %v1695_v27 = vpop.f32.mrf.mxu2 }
 0xb93   :  { %v1696_v39 = vadd.f32 %v2205_v30, %v1695_v27 }
 0xba3   :  { %v1698_v28 = vpop.f32.mrf.mxu2 }
 0xba4   :  { %v1699_v34 = vadd.f32 %v2205_v30, %v1698_v28 }
 0xba6   :  { %2189 = vtanh.f32 %v1699_v34 }
 0xba7   :  { %2191 = vtanh.f32 %v1696_v39 }
 0xba8   :  { %2193 = vtanh.f32 %v1693_v13 }
 0xbab   :  { %v1701_v40 = vpop.f32.mrf.mxu2 }
 0xbac   :  { %v2190_v44 = vpop.eup %2189  ;;  %v1702_v62 = vadd.f32 %v2205_v30, %v1701_v40 }
 0xbad   :  { %v2192_v46 = vpop.eup %2191  ;;  %v1864_v53 = vmul.f32 %v2190_v44, %v1845_v48 }
 0xbae   :  { %v2194_v49 = vpop.eup %2193  ;;  %v1863_v57 = vmul.f32 %v2192_v46, %v1840_v54 }
 0xbaf   :  { %v1862_v0 = vmul.f32 %v2194_v49, %v1835_v47  ;;  %v1877_v2 = vrot.slane %v1864_v53, 4 }
 0xbb0   :  { %v1875_v3 = vrot.slane %v1863_v57, 4 }
 0xbb1   :  { %v1874_v4 = vrot.slane %v1862_v0, 4 }
 0xbb2   :  { %v1878_v45 = vsel %vm1765_vm11, %v1875_v3, %v1877_v2 }
 0xbb3   :  { %v1704_v61 = vpop.f32.mrf.mxu2  ;;  %v1876_v6 = vsel %vm1765_vm11, %v1874_v4, %v1875_v3  ;;  %v1889_v1 = vsel %vm225_vm4, %v1878_v45, 0.0 }
 0xbb4   :  { %v1705_v63 = vadd.f32 %v2205_v30, %v1704_v61  ;;  %v1888_v11 = vsel %vm225_vm4, %v1876_v6, 0.0 }
 0xbb5   :  { %v1890_v9 = vadd.f32 %v1889_v1, %v1888_v11 }
 0xbb6   :  { %2195 = vtanh.f32 %v1705_v63 }
 0xbb7   :  { %2197 = vtanh.f32 %v1702_v62  ;;  %v1891_v37 = vrot.slane %v1890_v9, 4 }
 0xbb9   :  { %v1892_v17 = vadd.f32 %v1891_v37, %v1890_v9 }
 0xbbb   :  { %v1707_v5 = vpop.f32.mrf.mxu2  ;;  %v1893_v29 = vrot.slane %v1892_v17, 2 }
 0xbbc   :  { %v2196_v7 = vpop.eup %2195  ;;  %v1708_v8 = vadd.f32 %v2205_v30, %v1707_v5 }
 0xbbd   :  { %v2198_v51 = vpop.eup %2197  ;;  %v1866_v12 = vmul.f32 %v2196_v7, %v1855_v10  ;;  %v1894_v33 = vadd.f32 %v1893_v29, %v1892_v17 }
 0xbbe   :  { %2199 = vtanh.f32 %v1708_v8  ;;  %v1865_v36 = vmul.f32 %v2198_v51, %v1850_v55 }
 0xbbf   :  { %v1880_v14 = vrot.slane %v1866_v12, 4  ;;  %v1895_v52 = vrot.slane %v1894_v33, 1 }
 0xbc0   :  { %v1879_v59 = vrot.slane %v1865_v36, 4 }
 0xbc1   :  { %v1896_v21 = vadd.f32 %v1895_v52, %v1894_v33 }
 0xbc2   :  { %v1881_v15 = vsel %vm1765_vm11, %v1879_v59, %v1880_v14 }
 0xbc3   :  { %v1897_v23 = vsel %vm225_vm4, %v1881_v15, 0.0 }
 0xbc4   :  { %v2200_v38 = vpop.eup %2199 }
 0xbc5   :  { %v1867_v60 = vmul.f32 %v2200_v38, %v1860_v58 }
 0xbc7   :  { %v1882_v16 = vrot.slane %v1867_v60, 4 }
 0xbc9   :  { %v1883_v18 = vsel %vm1765_vm11, %v1880_v14, %v1882_v16 }
 0xbca   :  { %v1898_v26 = vsel %vm225_vm4, %v1883_v18, 0.0 }
 0xbcb   :  { %v1899_v32 = vadd.f32 %v1898_v26, %v1897_v23 }
 0xbcd   :  { %v1900_v31 = vrot.slane %v1899_v32, 4 }
 0xbcf   :  { %v1901_v43 = vadd.f32 %v1900_v31, %v1899_v32 }
 0xbd1   :  { %v1902_v50 = vrot.slane %v1901_v43, 2 }
 0xbd3   :  { %v1903_v56 = vadd.f32 %v1902_v50, %v1901_v43 }
 0xbd5   :  { %v1904_v20 = vrot.slane %v1903_v56, 1 }
 0xbd7   :  { %v1905_v19 = vadd.f32 %v1904_v20, %v1903_v56 }
 0xbd9   :  { %v1910_v22 = vsel %vm1909_vm7, %v1905_v19, %v1896_v21 }
 0xbda   :  { %2026 = vmatmul.msk.f32.vlgmr.msrb.gmra.mxu3 %vm225_vm4, %v1910_v22 }
 0xc5d   :  { %v1930_v25 = vpop.f32.mrf.mxu3 }
 0xc5e   :  { %v1931_v27 = vadd.f32 %v2064_v24, %v1930_v25 }
 0xc60   :  { %2201 = vtanh.f32 %v1931_v27 }
 0xc66   :  { %v2202_v35 = vpop.eup %2201 }
 0xc67   :  { %1935 = vst.msk [vmem:[#allocation3] sm:$0x3] %vm1934_vm8, %v2202_v35 }
 0xc68   :  { %1946 = dma.vmem_to_hbm [thread:$0]  %s1942_s10, 32, %s1944_s14, [#allocation4]  }
 0xc69   :  { %2230 = dma.done.wait [#allocation4], 32  }
 0xc6a   :  { %2231 = vsyncadd [#allocation4], 4294967264 }
 0xc6b   :  { %1951 = vsyncpa [#allocation4], 1 }

</bundles_post_ra>
